<compile_context>
chip_gen: v7x
topology: tpu7x:2x2x1
jax: 0.10.0
libtpu: 0.0.40
codegen_flags: <defaults>
</compile_context>

<pallas_src>
import functools

import jax
import jax.numpy as jnp
from jax.experimental import pallas as pl
from jax.experimental.pallas import tpu as pltpu


MATMUL_DTYPE = jnp.bfloat16   # MXU operand dtype; accumulation stays f32.


# ----------------------------------------------------------------------------
# Pallas kernels
# ----------------------------------------------------------------------------
def _gru_chunk(x_ref, wih_ref, whh_ref, bih_ref, bhn_ref, h_ref, gi_ref,
               store_fn, t_actual, mask_tail):
    """Run the recurrent steps for the current (batch tile, time chunk).

    x_ref  : (Tt, Bt, Din)  time-major input chunk (bf16)
    wih_ref: (Din, 3Hp)     input->gates weight, gate-blocked, bf16
    whh_ref: (Hp, 3Hp)      hidden->gates weight, gate-blocked, bf16
    bih_ref: (1, 3Hp)       f32 (b_ih with b_hh's r/z components folded in)
    bhn_ref: (1, Hp)        f32 (b_hn only; used inside the r* term)
    h_ref  : (Bt, Hp)       f32 VMEM scratch carrying h across time chunks
    gi_ref : (Tt, Bt, 3Hp)  bf16 VMEM scratch for the hoisted input projection
    """
    Tt, Bt, Din = x_ref.shape
    Hp = whh_ref.shape[0]

    # Hoisted input projection: one large MXU matmul for the whole chunk.
    x = x_ref[...].reshape(Tt * Bt, Din)
    gi = jnp.dot(x, wih_ref[...], preferred_element_type=jnp.float32)
    gi_ref[...] = (gi + bih_ref[...]).reshape(Tt, Bt, 3 * Hp).astype(
        gi_ref.dtype)

    whh = whh_ref[...]
    bhn = bhn_ref[...]
    t_base = pl.program_id(1) * Tt

    def step(i, h):
        gi_t = gi_ref[i].astype(jnp.float32)                # (Bt, 3Hp)
        gh = jnp.dot(h.astype(whh.dtype), whh,
                     preferred_element_type=jnp.float32)
        # Gate slices start at 0 / Hp / 2Hp -> lane-tile aligned (free views).
        r = jax.nn.sigmoid(gi_t[:, 0:Hp] + gh[:, 0:Hp])
        z = jax.nn.sigmoid(gi_t[:, Hp:2 * Hp] + gh[:, Hp:2 * Hp])
        n = jnp.tanh(gi_t[:, 2 * Hp:3 * Hp]
                     + r * (gh[:, 2 * Hp:3 * Hp] + bhn))
        h_new = (1.0 - z) * n + z * h
        if mask_tail:
            # Freeze h past the true sequence length (ragged final chunk).
            h_new = jnp.where(t_base + i < t_actual, h_new, h)
        store_fn(i, h_new)
        return h_new

    # Partial unroll: full unroll at large Tt inflates vreg pressure / spills.
    h_final = jax.lax.fori_loop(0, Tt, step, h_ref[...],
                                unroll=min(Tt, 8))
    h_ref[...] = h_final
    return h_final


def gru_seq_kernel(t_actual, mask_tail,
                   x_ref, wih_ref, whh_ref, bih_ref, bhn_ref,
                   hseq_ref, h_ref, gi_ref):
    """Intermediate GRU layer: writes the full hidden sequence (time-major)."""
    @pl.when(pl.program_id(1) == 0)
    def _():
        h_ref[...] = jnp.zeros_like(h_ref)

    def store(i, h_new):
        hseq_ref[i] = h_new.astype(hseq_ref.dtype)

    _gru_chunk(x_ref, wih_ref, whh_ref, bih_ref, bhn_ref, h_ref, gi_ref,
               store, t_actual, mask_tail)


def gru_fc_kernel(t_actual, mask_tail,
                  x_ref, wih_ref, whh_ref, bih_ref, bhn_ref, wfc_ref, bfc_ref,
                  out_ref, h_ref, gi_ref):
    """Last GRU layer with the fc(relu(.)) head fused; no hseq writeback."""
    @pl.when(pl.program_id(1) == 0)
    def _():
        h_ref[...] = jnp.zeros_like(h_ref)

    h_last = _gru_chunk(x_ref, wih_ref, whh_ref, bih_ref, bhn_ref,
                        h_ref, gi_ref, lambda i, h: None,
                        t_actual, mask_tail)

    @pl.when(pl.program_id(1) == pl.num_programs(1) - 1)
    def _():
        hr = jnp.maximum(h_last, 0.0).astype(wfc_ref.dtype)
        out_ref[...] = (jnp.dot(hr, wfc_ref[...],
                                preferred_element_type=jnp.float32)
                        + bfc_ref[...]).astype(out_ref.dtype)


# ----------------------------------------------------------------------------
# Wrappers
# ----------------------------------------------------------------------------
def _round_up(x, m):
    return ((x + m - 1) // m) * m


def _pick_time_chunk(T, cap=64):
    """Biggest chunk <= cap; prefer an exact divisor to avoid a masked tail."""
    if T <= cap:
        return T
    for tc in range(cap, cap // 2, -1):
        if T % tc == 0:
            return tc
    return cap


def _gru_layer_call(kernel, x_tbd, weights, extra_inputs, out_shape, out_spec,
                    Bt, Tt):
    Tp, Bp, Din = x_tbd.shape
    wih, whh, bih, bhn = weights
    Hp = whh.shape[0]
    nb, nt = Bp // Bt, Tp // Tt
    const = lambda b, t: (0, 0)
    # Grid-invariant blocks: single-buffer them (nothing to prefetch).
    invariant = lambda w: pl.BlockSpec(w.shape, const,
                                       pipeline_mode=pl.Buffered(1))
    in_specs = [
        pl.BlockSpec((Tt, Bt, Din), lambda b, t: (t, b, 0)),
        invariant(wih), invariant(whh), invariant(bih), invariant(bhn),
    ] + [invariant(e) for e in extra_inputs]
    return pl.pallas_call(
        kernel,
        out_shape=out_shape,
        grid_spec=pltpu.PrefetchScalarGridSpec(
            num_scalar_prefetch=0,
            grid=(nb, nt),
            in_specs=in_specs,
            out_specs=out_spec,
            scratch_shapes=[pltpu.VMEM((Bt, Hp), jnp.float32),
                            pltpu.VMEM((Tt, Bt, 3 * Hp), MATMUL_DTYPE)],
        ),
        compiler_params=pltpu.CompilerParams(
            dimension_semantics=("parallel", "arbitrary")),
    )(x_tbd, wih, whh, bih, bhn, *extra_inputs)


def gru_layer_seq(x_tbd, weights, Bt, Tt, t_actual, mask_tail):
    """(Tp, Bp, Din) -> (Tp, Bp, Hp) hidden sequence (bf16, time-major)."""
    Tp, Bp, _ = x_tbd.shape
    Hp = weights[1].shape[0]
    kernel = functools.partial(gru_seq_kernel, t_actual, mask_tail)
    return _gru_layer_call(
        kernel, x_tbd, weights, [],
        out_shape=jax.ShapeDtypeStruct((Tp, Bp, Hp), MATMUL_DTYPE),
        out_spec=pl.BlockSpec((Tt, Bt, Hp), lambda b, t: (t, b, 0)),
        Bt=Bt, Tt=Tt)


def gru_layer_fc(x_tbd, weights, wfc, bfc, Bt, Tt, t_actual, mask_tail):
    """Last layer: (Tp, Bp, Din) -> (Bp, Op) = fc(relu(h_T)), fused."""
    Tp, Bp, _ = x_tbd.shape
    Op = wfc.shape[1]
    kernel = functools.partial(gru_fc_kernel, t_actual, mask_tail)
    return _gru_layer_call(
        kernel, x_tbd, weights, [wfc, bfc],
        out_shape=jax.ShapeDtypeStruct((Bp, Op), jnp.float32),
        out_spec=pl.BlockSpec((Bt, Op), lambda b, t: (b, 0)),
        Bt=Bt, Tt=Tt)


def prepare_params(params, input_size, hidden_size, output_size):
    """One-time weight prep: transpose, per-gate (8,128) padding, bf16 cast,
    and folding b_hh's r/z components into b_ih (b_hn kept separate).

    NOTE: per-gate lane padding (H -> round_up(H,128)) is intended for
    H >= 128; for small H it over-pads but stays correct.
    """
    H = hidden_size
    Hp = _round_up(H, 128)
    Dp = _round_up(input_size, 128)
    Op = _round_up(output_size, 128)

    def pad_w(w, in_p):                       # (3H, In) -> (in_p, 3Hp) bf16
        gates = []
        for g in range(3):
            wg = jnp.pad(w[g * H:(g + 1) * H, :].T,
                         ((0, in_p - w.shape[1]), (0, Hp - H)))
            gates.append(wg)
        return jnp.concatenate(gates, axis=1).astype(MATMUL_DTYPE)

    layers = []
    for i, (w_ih, w_hh, b_ih, b_hh) in enumerate(params["gru_layers"]):
        in_p = Dp if i == 0 else Hp
        # Fold b_hh's r/z components into b_ih; only b_hn stays separate
        # (it sits inside the r * (...) term of the n gate).
        b_r = b_ih[0:H] + b_hh[0:H]
        b_z = b_ih[H:2 * H] + b_hh[H:2 * H]
        b_n = b_ih[2 * H:3 * H]
        bih_p = jnp.concatenate(
            [jnp.pad(b, (0, Hp - H)) for b in (b_r, b_z, b_n)]
        )[None, :].astype(jnp.float32)
        bhn_p = jnp.pad(b_hh[2 * H:3 * H], (0, Hp - H))[None, :].astype(
            jnp.float32)
        layers.append((pad_w(w_ih, in_p), pad_w(w_hh, Hp), bih_p, bhn_p))

    w_fc = jnp.pad(params["w_fc"].T,
                   ((0, Hp - hidden_size), (0, Op - output_size))
                   ).astype(MATMUL_DTYPE)
    b_fc = jnp.pad(params["b_fc"],
                   (0, Op - output_size))[None, :].astype(jnp.float32)
    return {"layers": layers, "w_fc": w_fc, "b_fc": b_fc,
            "Dp": Dp, "Hp": Hp, "Op": Op,
            "D": input_size, "H": hidden_size, "O": output_size}


def gru_model_forward(x_btd, prep, time_chunk=None, batch_tile=None):
    """Full GRUModel forward.  x_btd: (B, T, D) batch-first like PyTorch."""
    B, T, D = x_btd.shape
    Bp = max(8, _round_up(B, 8))
    Tt = time_chunk if time_chunk is not None else _pick_time_chunk(T)
    nt = pl.cdiv(T, Tt)
    Tp = nt * Tt
    mask_tail = (Tp != T)
    # Batch tile: split padded batch in two (>= 8 rows each) so the "parallel"
    # batch grid axis can be sharded across v7x's 2 TensorCores.
    if batch_tile is not None:
        Bt = batch_tile
    else:
        Bt = Bp // 2 if Bp % 16 == 0 else Bp

    # Pad batch/time/feature and reorder to time-major in one XLA copy,
    # casting to the MXU operand dtype (weight prep is done in prepare_params).
    xp = jnp.zeros((Tp, Bp, prep["Dp"]), MATMUL_DTYPE)
    xp = xp.at[:T, :B, :D].set(
        jnp.transpose(x_btd, (1, 0, 2)).astype(MATMUL_DTYPE))

    h = xp
    for weights in prep["layers"][:-1]:
        h = gru_layer_seq(h, weights, Bt, Tt, T, mask_tail)
    out_p = gru_layer_fc(h, prep["layers"][-1], prep["w_fc"], prep["b_fc"],
                         Bt, Tt, T, mask_tail)
    return out_p[:B, :prep["O"]]


# ----------------------------------------------------------------------------
# Deterministic parameter init (same shapes / init range as PyTorch defaults)
# ----------------------------------------------------------------------------
def init_params(key, input_size, hidden_size, num_layers, output_size):
    params = {"gru_layers": []}
    bound = 1.0 / jnp.sqrt(hidden_size)
    for layer in range(num_layers):
        in_sz = input_size if layer == 0 else hidden_size
        key, k1, k2, k3, k4 = jax.random.split(key, 5)
        w_ih = jax.random.uniform(k1, (3 * hidden_size, in_sz), jnp.float32, -bound, bound)
        w_hh = jax.random.uniform(k2, (3 * hidden_size, hidden_size), jnp.float32, -bound, bound)
        b_ih = jax.random.uniform(k3, (3 * hidden_size,), jnp.float32, -bound, bound)
        b_hh = jax.random.uniform(k4, (3 * hidden_size,), jnp.float32, -bound, bound)
        params["gru_layers"].append((w_ih, w_hh, b_ih, b_hh))
    key, k5, k6 = jax.random.split(key, 3)
    fc_bound = 1.0 / jnp.sqrt(hidden_size)
    params["w_fc"] = jax.random.uniform(k5, (output_size, hidden_size), jnp.float32, -fc_bound, fc_bound)
    params["b_fc"] = jax.random.uniform(k6, (output_size,), jnp.float32, -fc_bound, fc_bound)
    return params


# ----------------------------------------------------------------------------
# Pure-JAX f32 reference (for correctness check)
# ----------------------------------------------------------------------------
def gru_model_reference(x_btd, params):
    B = x_btd.shape[0]
    x = x_btd
    for (w_ih, w_hh, b_ih, b_hh) in params["gru_layers"]:
        H = w_hh.shape[1]
        h0 = jnp.zeros((B, H), jnp.float32)

        def step(h, x_t):
            gi = x_t @ w_ih.T + b_ih
            gh = h @ w_hh.T + b_hh
            i_r, i_z, i_n = jnp.split(gi, 3, axis=-1)
            h_r, h_z, h_n = jnp.split(gh, 3, axis=-1)
            r = jax.nn.sigmoid(i_r + h_r)
            z = jax.nn.sigmoid(i_z + h_z)
            n = jnp.tanh(i_n + r * h_n)
            h_new = (1.0 - z) * n + z * h
            return h_new, h_new

        _, hs = jax.lax.scan(step, h0, jnp.transpose(x, (1, 0, 2)))
        x = jnp.transpose(hs, (1, 0, 2))
    h_last = x[:, -1, :]
    return jnp.maximum(h_last, 0.0) @ params["w_fc"].T + params["b_fc"]


# ----------------------------------------------------------------------------
if __name__ == "__main__":
    batch, seq_len = 2, 8
    input_size, hidden_size, num_layers, output_size = 16, 32, 2, 8

    key = jax.random.PRNGKey(0)
    key, xkey = jax.random.split(key)
    x = jax.random.normal(xkey, (batch, seq_len, input_size), jnp.float32)

    params = init_params(key, input_size, hidden_size, num_layers, output_size)
    prep = prepare_params(params, input_size, hidden_size, output_size)

    ref = gru_model_reference(x, params)

    # Default chunking (T divides Tt -> no tail masking).
    out = jax.block_until_ready(gru_model_forward(x, prep))
    assert out.shape == (batch, output_size)
    # bf16 MXU operands with f32 accumulation / f32 hidden-state carry ->
    # compare against the pure-f32 reference with a looser tolerance.
    max_diff = float(jnp.max(jnp.abs(out - ref)))
    assert jnp.allclose(out, ref, atol=5e-2, rtol=5e-2), (
        f"mismatch: max abs diff = {max_diff}")

    # Exercise the ragged-tail path (T % Tt != 0 -> masked final chunk).
    out2 = jax.block_until_ready(gru_model_forward(x, prep, time_chunk=3))
    max_diff2 = float(jnp.max(jnp.abs(out2 - ref)))
    assert jnp.allclose(out2, ref, atol=5e-2, rtol=5e-2), (
        f"mismatch (masked tail): max abs diff = {max_diff2}")

    print("KERNEL_OK")
</pallas_src>

<mosaic_0001>
module attributes {stable_mosaic.version = 11 : i64} {
  func.func @gru_seq_kernel(%arg0: i32, %arg1: i32, %arg2: memref<8x8x128xbf16, #tpu.memory_space<vmem>>, %arg3: memref<128x384xbf16, #tpu.memory_space<vmem>>, %arg4: memref<128x384xbf16, #tpu.memory_space<vmem>>, %arg5: memref<1x384xf32, #tpu.memory_space<vmem>>, %arg6: memref<1x128xf32, #tpu.memory_space<vmem>>, %arg7: memref<8x8x128xbf16, #tpu.memory_space<vmem>>, %arg8: memref<8x128xf32, #tpu.memory_space<vmem>>, %arg9: memref<8x8x384xbf16, #tpu.memory_space<vmem>>) attributes {dimension_semantics = [#tpu.dimension_semantics<parallel>, #tpu.dimension_semantics<arbitrary>], iteration_bounds = array<i64: 1, 1>, scalar_prefetch = 0 : i64, scratch_operands = 2 : i64, tpu.core_type = #tpu.core_type<tc>, window_params = [{transform_indices = @transform_0, window_bounds = array<i64: 8, 8, 128>}, {pipeline_mode = #tpu.pipeline_mode<synchronous>, transform_indices = @transform_1, window_bounds = array<i64: 128, 384>}, {pipeline_mode = #tpu.pipeline_mode<synchronous>, transform_indices = @transform_2, window_bounds = array<i64: 128, 384>}, {pipeline_mode = #tpu.pipeline_mode<synchronous>, transform_indices = @transform_3, window_bounds = array<i64: 1, 384>}, {pipeline_mode = #tpu.pipeline_mode<synchronous>, transform_indices = @transform_4, window_bounds = array<i64: 1, 128>}, {transform_indices = @transform_5, window_bounds = array<i64: 8, 8, 128>}]} {
    %c0_i32 = arith.constant 0 : i32
    %0 = arith.cmpi eq, %arg1, %c0_i32 : i32
    %1 = arith.extui %0 : i1 to i32
    %c0_i32_0 = arith.constant 0 : i32
    %2 = arith.cmpi ne, %1, %c0_i32_0 : i32
    scf.if %2 {
      %cst_83 = arith.constant 0.000000e+00 : f32
      %329 = vector.broadcast %cst_83 : f32 to vector<8x128xf32>
      %c0_84 = arith.constant 0 : index
      %c0_85 = arith.constant 0 : index
      %330 = vector.load %arg8[%c0_84, %c0_85] : memref<8x128xf32, #tpu.memory_space<vmem>>, vector<8x128xf32>
      tpu.vector_store %arg8[%c0_84, %c0_85], %329 {strides = array<i32>} : memref<8x128xf32, #tpu.memory_space<vmem>>, vector<8x128xf32>,
    } else {
    }
    %c0 = arith.constant 0 : index
    %c0_1 = arith.constant 0 : index
    %c0_2 = arith.constant 0 : index
    %3 = vector.load %arg2[%c0, %c0_1, %c0_2] : memref<8x8x128xbf16, #tpu.memory_space<vmem>>, vector<8x8x128xbf16>
    %4 = vector.shape_cast %3 : vector<8x8x128xbf16> to vector<64x128xbf16>
    %c0_3 = arith.constant 0 : index
    %c0_4 = arith.constant 0 : index
    %5 = vector.load %arg3[%c0_3, %c0_4] : memref<128x384xbf16, #tpu.memory_space<vmem>>, vector<128x384xbf16>
    %cst = arith.constant dense<0.000000e+00> : vector<64x384xf32>
    %6 = tpu.matmul %4, %5, %cst {dimension_numbers = #tpu.dot_dimension_numbers<[1], [0], [0], [1], [0, 0, 1, 1], [], []>} : vector<64x128xbf16>, vector<128x384xbf16>, vector<64x384xf32> -> vector<64x384xf32>
    %c0_5 = arith.constant 0 : index
    %c0_6 = arith.constant 0 : index
    %7 = vector.load %arg5[%c0_5, %c0_6] : memref<1x384xf32, #tpu.memory_space<vmem>>, vector<1x384xf32>
    %8 = vector.broadcast %7 : vector<1x384xf32> to vector<64x384xf32>
    %9 = arith.addf %6, %8 : vector<64x384xf32>
    %10 = vector.shape_cast %9 : vector<64x384xf32> to vector<8x8x384xf32>
    %11 = arith.truncf %10 : vector<8x8x384xf32> to vector<8x8x384xbf16>
    %c0_7 = arith.constant 0 : index
    %c0_8 = arith.constant 0 : index
    %c0_9 = arith.constant 0 : index
    %12 = vector.load %arg9[%c0_7, %c0_8, %c0_9] : memref<8x8x384xbf16, #tpu.memory_space<vmem>>, vector<8x8x384xbf16>
    tpu.vector_store %arg9[%c0_7, %c0_8, %c0_9], %11 {strides = array<i32>} : memref<8x8x384xbf16, #tpu.memory_space<vmem>>, vector<8x8x384xbf16>,
    %c0_10 = arith.constant 0 : index
    %c0_11 = arith.constant 0 : index
    %13 = vector.load %arg4[%c0_10, %c0_11] : memref<128x384xbf16, #tpu.memory_space<vmem>>, vector<128x384xbf16>
    %c0_12 = arith.constant 0 : index
    %c0_13 = arith.constant 0 : index
    %14 = vector.load %arg6[%c0_12, %c0_13] : memref<1x128xf32, #tpu.memory_space<vmem>>, vector<1x128xf32>
    %c0_14 = arith.constant 0 : index
    %c0_15 = arith.constant 0 : index
    %15 = vector.load %arg8[%c0_14, %c0_15] : memref<8x128xf32, #tpu.memory_space<vmem>>, vector<8x128xf32>
    %c0_i32_16 = arith.constant 0 : i32
    %16 = arith.index_cast %c0_i32_16 : i32 to index
    %c0_17 = arith.constant 0 : index
    %c0_18 = arith.constant 0 : index
    %17 = vector.load %arg9[%16, %c0_17, %c0_18] : memref<8x8x384xbf16, #tpu.memory_space<vmem>>, vector<1x8x384xbf16>
    %18 = vector.shape_cast %17 : vector<1x8x384xbf16> to vector<8x384xbf16>
    %19 = arith.extf %18 : vector<8x384xbf16> to vector<8x384xf32>
    %20 = arith.truncf %15 : vector<8x128xf32> to vector<8x128xbf16>
    %cst_19 = arith.constant dense<0.000000e+00> : vector<8x384xf32>
    %21 = tpu.matmul %20, %13, %cst_19 {dimension_numbers = #tpu.dot_dimension_numbers<[1], [0], [0], [1], [0, 0, 1, 1], [], []>} : vector<8x128xbf16>, vector<128x384xbf16>, vector<8x384xf32> -> vector<8x384xf32>
    %22 = vector.extract_strided_slice %19 {offsets = [0, 0], sizes = [8, 128], strides = [1, 1]} : vector<8x384xf32> to vector<8x128xf32>
    %23 = vector.extract_strided_slice %21 {offsets = [0, 0], sizes = [8, 128], strides = [1, 1]} : vector<8x384xf32> to vector<8x128xf32>
    %24 = arith.addf %22, %23 : vector<8x128xf32>
    %25 = arith.negf %24 : vector<8x128xf32>
    %26 = math.exp %25 : vector<8x128xf32>
    %cst_20 = arith.constant 1.000000e+00 : f32
    %27 = vector.broadcast %cst_20 : f32 to vector<8x128xf32>
    %28 = arith.addf %27, %26 : vector<8x128xf32>
    %29 = arith.divf %27, %28 : vector<8x128xf32>
    %30 = vector.extract_strided_slice %19 {offsets = [0, 128], sizes = [8, 128], strides = [1, 1]} : vector<8x384xf32> to vector<8x128xf32>
    %31 = vector.extract_strided_slice %21 {offsets = [0, 128], sizes = [8, 128], strides = [1, 1]} : vector<8x384xf32> to vector<8x128xf32>
    %32 = arith.addf %30, %31 : vector<8x128xf32>
    %33 = arith.negf %32 : vector<8x128xf32>
    %34 = math.exp %33 : vector<8x128xf32>
    %cst_21 = arith.constant 1.000000e+00 : f32
    %35 = vector.broadcast %cst_21 : f32 to vector<8x128xf32>
    %36 = arith.addf %35, %34 : vector<8x128xf32>
    %37 = arith.divf %35, %36 : vector<8x128xf32>
    %38 = vector.extract_strided_slice %19 {offsets = [0, 256], sizes = [8, 128], strides = [1, 1]} : vector<8x384xf32> to vector<8x128xf32>
    %39 = vector.extract_strided_slice %21 {offsets = [0, 256], sizes = [8, 128], strides = [1, 1]} : vector<8x384xf32> to vector<8x128xf32>
    %40 = vector.broadcast %14 : vector<1x128xf32> to vector<8x128xf32>
    %41 = arith.addf %39, %40 : vector<8x128xf32>
    %42 = arith.mulf %29, %41 : vector<8x128xf32>
    %43 = arith.addf %38, %42 : vector<8x128xf32>
    %44 = math.tanh %43 : vector<8x128xf32>
    %cst_22 = arith.constant 1.000000e+00 : f32
    %45 = vector.broadcast %cst_22 : f32 to vector<8x128xf32>
    %46 = arith.subf %45, %37 : vector<8x128xf32>
    %47 = arith.mulf %46, %44 : vector<8x128xf32>
    %48 = arith.mulf %37, %15 : vector<8x128xf32>
    %49 = arith.addf %47, %48 : vector<8x128xf32>
    %50 = arith.truncf %49 : vector<8x128xf32> to vector<8x128xbf16>
    %51 = arith.index_cast %c0_i32_16 : i32 to index
    %c0_23 = arith.constant 0 : index
    %c0_24 = arith.constant 0 : index
    %52 = vector.load %arg7[%51, %c0_23, %c0_24] : memref<8x8x128xbf16, #tpu.memory_space<vmem>>, vector<1x8x128xbf16>
    %53 = vector.shape_cast %52 : vector<1x8x128xbf16> to vector<8x128xbf16>
    %54 = vector.shape_cast %50 : vector<8x128xbf16> to vector<1x8x128xbf16>
    tpu.vector_store %arg7[%51, %c0_23, %c0_24], %54 {strides = array<i32>} : memref<8x8x128xbf16, #tpu.memory_space<vmem>>, vector<1x8x128xbf16>,
    %c1_i32 = arith.constant 1 : i32
    %55 = arith.index_cast %c1_i32 : i32 to index
    %c0_25 = arith.constant 0 : index
    %c0_26 = arith.constant 0 : index
    %56 = vector.load %arg9[%55, %c0_25, %c0_26] : memref<8x8x384xbf16, #tpu.memory_space<vmem>>, vector<1x8x384xbf16>
    %57 = vector.shape_cast %56 : vector<1x8x384xbf16> to vector<8x384xbf16>
    %58 = arith.extf %57 : vector<8x384xbf16> to vector<8x384xf32>
    %59 = arith.truncf %49 : vector<8x128xf32> to vector<8x128xbf16>
    %cst_27 = arith.constant dense<0.000000e+00> : vector<8x384xf32>
    %60 = tpu.matmul %59, %13, %cst_27 {dimension_numbers = #tpu.dot_dimension_numbers<[1], [0], [0], [1], [0, 0, 1, 1], [], []>} : vector<8x128xbf16>, vector<128x384xbf16>, vector<8x384xf32> -> vector<8x384xf32>
    %61 = vector.extract_strided_slice %58 {offsets = [0, 0], sizes = [8, 128], strides = [1, 1]} : vector<8x384xf32> to vector<8x128xf32>
    %62 = vector.extract_strided_slice %60 {offsets = [0, 0], sizes = [8, 128], strides = [1, 1]} : vector<8x384xf32> to vector<8x128xf32>
    %63 = arith.addf %61, %62 : vector<8x128xf32>
    %64 = arith.negf %63 : vector<8x128xf32>
    %65 = math.exp %64 : vector<8x128xf32>
    %cst_28 = arith.constant 1.000000e+00 : f32
    %66 = vector.broadcast %cst_28 : f32 to vector<8x128xf32>
    %67 = arith.addf %66, %65 : vector<8x128xf32>
    %68 = arith.divf %66, %67 : vector<8x128xf32>
    %69 = vector.extract_strided_slice %58 {offsets = [0, 128], sizes = [8, 128], strides = [1, 1]} : vector<8x384xf32> to vector<8x128xf32>
    %70 = vector.extract_strided_slice %60 {offsets = [0, 128], sizes = [8, 128], strides = [1, 1]} : vector<8x384xf32> to vector<8x128xf32>
    %71 = arith.addf %69, %70 : vector<8x128xf32>
    %72 = arith.negf %71 : vector<8x128xf32>
    %73 = math.exp %72 : vector<8x128xf32>
    %cst_29 = arith.constant 1.000000e+00 : f32
    %74 = vector.broadcast %cst_29 : f32 to vector<8x128xf32>
    %75 = arith.addf %74, %73 : vector<8x128xf32>
    %76 = arith.divf %74, %75 : vector<8x128xf32>
    %77 = vector.extract_strided_slice %58 {offsets = [0, 256], sizes = [8, 128], strides = [1, 1]} : vector<8x384xf32> to vector<8x128xf32>
    %78 = vector.extract_strided_slice %60 {offsets = [0, 256], sizes = [8, 128], strides = [1, 1]} : vector<8x384xf32> to vector<8x128xf32>
    %79 = vector.broadcast %14 : vector<1x128xf32> to vector<8x128xf32>
    %80 = arith.addf %78, %79 : vector<8x128xf32>
    %81 = arith.mulf %68, %80 : vector<8x128xf32>
    %82 = arith.addf %77, %81 : vector<8x128xf32>
    %83 = math.tanh %82 : vector<8x128xf32>
    %cst_30 = arith.constant 1.000000e+00 : f32
    %84 = vector.broadcast %cst_30 : f32 to vector<8x128xf32>
    %85 = arith.subf %84, %76 : vector<8x128xf32>
    %86 = arith.mulf %85, %83 : vector<8x128xf32>
    %87 = arith.mulf %76, %49 : vector<8x128xf32>
    %88 = arith.addf %86, %87 : vector<8x128xf32>
    %89 = arith.truncf %88 : vector<8x128xf32> to vector<8x128xbf16>
    %90 = arith.index_cast %c1_i32 : i32 to index
    %c0_31 = arith.constant 0 : index
    %c0_32 = arith.constant 0 : index
    %91 = vector.load %arg7[%90, %c0_31, %c0_32] : memref<8x8x128xbf16, #tpu.memory_space<vmem>>, vector<1x8x128xbf16>
    %92 = vector.shape_cast %91 : vector<1x8x128xbf16> to vector<8x128xbf16>
    %93 = vector.shape_cast %89 : vector<8x128xbf16> to vector<1x8x128xbf16>
    tpu.vector_store %arg7[%90, %c0_31, %c0_32], %93 {strides = array<i32>} : memref<8x8x128xbf16, #tpu.memory_space<vmem>>, vector<1x8x128xbf16>,
    %c2_i32 = arith.constant 2 : i32
    %94 = arith.index_cast %c2_i32 : i32 to index
    %c0_33 = arith.constant 0 : index
    %c0_34 = arith.constant 0 : index
    %95 = vector.load %arg9[%94, %c0_33, %c0_34] : memref<8x8x384xbf16, #tpu.memory_space<vmem>>, vector<1x8x384xbf16>
    %96 = vector.shape_cast %95 : vector<1x8x384xbf16> to vector<8x384xbf16>
    %97 = arith.extf %96 : vector<8x384xbf16> to vector<8x384xf32>
    %98 = arith.truncf %88 : vector<8x128xf32> to vector<8x128xbf16>
    %cst_35 = arith.constant dense<0.000000e+00> : vector<8x384xf32>
    %99 = tpu.matmul %98, %13, %cst_35 {dimension_numbers = #tpu.dot_dimension_numbers<[1], [0], [0], [1], [0, 0, 1, 1], [], []>} : vector<8x128xbf16>, vector<128x384xbf16>, vector<8x384xf32> -> vector<8x384xf32>
    %100 = vector.extract_strided_slice %97 {offsets = [0, 0], sizes = [8, 128], strides = [1, 1]} : vector<8x384xf32> to vector<8x128xf32>
    %101 = vector.extract_strided_slice %99 {offsets = [0, 0], sizes = [8, 128], strides = [1, 1]} : vector<8x384xf32> to vector<8x128xf32>
    %102 = arith.addf %100, %101 : vector<8x128xf32>
    %103 = arith.negf %102 : vector<8x128xf32>
    %104 = math.exp %103 : vector<8x128xf32>
    %cst_36 = arith.constant 1.000000e+00 : f32
    %105 = vector.broadcast %cst_36 : f32 to vector<8x128xf32>
    %106 = arith.addf %105, %104 : vector<8x128xf32>
    %107 = arith.divf %105, %106 : vector<8x128xf32>
    %108 = vector.extract_strided_slice %97 {offsets = [0, 128], sizes = [8, 128], strides = [1, 1]} : vector<8x384xf32> to vector<8x128xf32>
    %109 = vector.extract_strided_slice %99 {offsets = [0, 128], sizes = [8, 128], strides = [1, 1]} : vector<8x384xf32> to vector<8x128xf32>
    %110 = arith.addf %108, %109 : vector<8x128xf32>
    %111 = arith.negf %110 : vector<8x128xf32>
    %112 = math.exp %111 : vector<8x128xf32>
    %cst_37 = arith.constant 1.000000e+00 : f32
    %113 = vector.broadcast %cst_37 : f32 to vector<8x128xf32>
    %114 = arith.addf %113, %112 : vector<8x128xf32>
    %115 = arith.divf %113, %114 : vector<8x128xf32>
    %116 = vector.extract_strided_slice %97 {offsets = [0, 256], sizes = [8, 128], strides = [1, 1]} : vector<8x384xf32> to vector<8x128xf32>
    %117 = vector.extract_strided_slice %99 {offsets = [0, 256], sizes = [8, 128], strides = [1, 1]} : vector<8x384xf32> to vector<8x128xf32>
    %118 = vector.broadcast %14 : vector<1x128xf32> to vector<8x128xf32>
    %119 = arith.addf %117, %118 : vector<8x128xf32>
    %120 = arith.mulf %107, %119 : vector<8x128xf32>
    %121 = arith.addf %116, %120 : vector<8x128xf32>
    %122 = math.tanh %121 : vector<8x128xf32>
    %cst_38 = arith.constant 1.000000e+00 : f32
    %123 = vector.broadcast %cst_38 : f32 to vector<8x128xf32>
    %124 = arith.subf %123, %115 : vector<8x128xf32>
    %125 = arith.mulf %124, %122 : vector<8x128xf32>
    %126 = arith.mulf %115, %88 : vector<8x128xf32>
    %127 = arith.addf %125, %126 : vector<8x128xf32>
    %128 = arith.truncf %127 : vector<8x128xf32> to vector<8x128xbf16>
    %129 = arith.index_cast %c2_i32 : i32 to index
    %c0_39 = arith.constant 0 : index
    %c0_40 = arith.constant 0 : index
    %130 = vector.load %arg7[%129, %c0_39, %c0_40] : memref<8x8x128xbf16, #tpu.memory_space<vmem>>, vector<1x8x128xbf16>
    %131 = vector.shape_cast %130 : vector<1x8x128xbf16> to vector<8x128xbf16>
    %132 = vector.shape_cast %128 : vector<8x128xbf16> to vector<1x8x128xbf16>
    tpu.vector_store %arg7[%129, %c0_39, %c0_40], %132 {strides = array<i32>} : memref<8x8x128xbf16, #tpu.memory_space<vmem>>, vector<1x8x128xbf16>,
    %c3_i32 = arith.constant 3 : i32
    %133 = arith.index_cast %c3_i32 : i32 to index
    %c0_41 = arith.constant 0 : index
    %c0_42 = arith.constant 0 : index
    %134 = vector.load %arg9[%133, %c0_41, %c0_42] : memref<8x8x384xbf16, #tpu.memory_space<vmem>>, vector<1x8x384xbf16>
    %135 = vector.shape_cast %134 : vector<1x8x384xbf16> to vector<8x384xbf16>
    %136 = arith.extf %135 : vector<8x384xbf16> to vector<8x384xf32>
    %137 = arith.truncf %127 : vector<8x128xf32> to vector<8x128xbf16>
    %cst_43 = arith.constant dense<0.000000e+00> : vector<8x384xf32>
    %138 = tpu.matmul %137, %13, %cst_43 {dimension_numbers = #tpu.dot_dimension_numbers<[1], [0], [0], [1], [0, 0, 1, 1], [], []>} : vector<8x128xbf16>, vector<128x384xbf16>, vector<8x384xf32> -> vector<8x384xf32>
    %139 = vector.extract_strided_slice %136 {offsets = [0, 0], sizes = [8, 128], strides = [1, 1]} : vector<8x384xf32> to vector<8x128xf32>
    %140 = vector.extract_strided_slice %138 {offsets = [0, 0], sizes = [8, 128], strides = [1, 1]} : vector<8x384xf32> to vector<8x128xf32>
    %141 = arith.addf %139, %140 : vector<8x128xf32>
    %142 = arith.negf %141 : vector<8x128xf32>
    %143 = math.exp %142 : vector<8x128xf32>
    %cst_44 = arith.constant 1.000000e+00 : f32
    %144 = vector.broadcast %cst_44 : f32 to vector<8x128xf32>
    %145 = arith.addf %144, %143 : vector<8x128xf32>
    %146 = arith.divf %144, %145 : vector<8x128xf32>
    %147 = vector.extract_strided_slice %136 {offsets = [0, 128], sizes = [8, 128], strides = [1, 1]} : vector<8x384xf32> to vector<8x128xf32>
    %148 = vector.extract_strided_slice %138 {offsets = [0, 128], sizes = [8, 128], strides = [1, 1]} : vector<8x384xf32> to vector<8x128xf32>
    %149 = arith.addf %147, %148 : vector<8x128xf32>
    %150 = arith.negf %149 : vector<8x128xf32>
    %151 = math.exp %150 : vector<8x128xf32>
    %cst_45 = arith.constant 1.000000e+00 : f32
    %152 = vector.broadcast %cst_45 : f32 to vector<8x128xf32>
    %153 = arith.addf %152, %151 : vector<8x128xf32>
    %154 = arith.divf %152, %153 : vector<8x128xf32>
    %155 = vector.extract_strided_slice %136 {offsets = [0, 256], sizes = [8, 128], strides = [1, 1]} : vector<8x384xf32> to vector<8x128xf32>
    %156 = vector.extract_strided_slice %138 {offsets = [0, 256], sizes = [8, 128], strides = [1, 1]} : vector<8x384xf32> to vector<8x128xf32>
    %157 = vector.broadcast %14 : vector<1x128xf32> to vector<8x128xf32>
    %158 = arith.addf %156, %157 : vector<8x128xf32>
    %159 = arith.mulf %146, %158 : vector<8x128xf32>
    %160 = arith.addf %155, %159 : vector<8x128xf32>
    %161 = math.tanh %160 : vector<8x128xf32>
    %cst_46 = arith.constant 1.000000e+00 : f32
    %162 = vector.broadcast %cst_46 : f32 to vector<8x128xf32>
    %163 = arith.subf %162, %154 : vector<8x128xf32>
    %164 = arith.mulf %163, %161 : vector<8x128xf32>
    %165 = arith.mulf %154, %127 : vector<8x128xf32>
    %166 = arith.addf %164, %165 : vector<8x128xf32>
    %167 = arith.truncf %166 : vector<8x128xf32> to vector<8x128xbf16>
    %168 = arith.index_cast %c3_i32 : i32 to index
    %c0_47 = arith.constant 0 : index
    %c0_48 = arith.constant 0 : index
    %169 = vector.load %arg7[%168, %c0_47, %c0_48] : memref<8x8x128xbf16, #tpu.memory_space<vmem>>, vector<1x8x128xbf16>
    %170 = vector.shape_cast %169 : vector<1x8x128xbf16> to vector<8x128xbf16>
    %171 = vector.shape_cast %167 : vector<8x128xbf16> to vector<1x8x128xbf16>
    tpu.vector_store %arg7[%168, %c0_47, %c0_48], %171 {strides = array<i32>} : memref<8x8x128xbf16, #tpu.memory_space<vmem>>, vector<1x8x128xbf16>,
    %c4_i32 = arith.constant 4 : i32
    %172 = arith.index_cast %c4_i32 : i32 to index
    %c0_49 = arith.constant 0 : index
    %c0_50 = arith.constant 0 : index
    %173 = vector.load %arg9[%172, %c0_49, %c0_50] : memref<8x8x384xbf16, #tpu.memory_space<vmem>>, vector<1x8x384xbf16>
    %174 = vector.shape_cast %173 : vector<1x8x384xbf16> to vector<8x384xbf16>
    %175 = arith.extf %174 : vector<8x384xbf16> to vector<8x384xf32>
    %176 = arith.truncf %166 : vector<8x128xf32> to vector<8x128xbf16>
    %cst_51 = arith.constant dense<0.000000e+00> : vector<8x384xf32>
    %177 = tpu.matmul %176, %13, %cst_51 {dimension_numbers = #tpu.dot_dimension_numbers<[1], [0], [0], [1], [0, 0, 1, 1], [], []>} : vector<8x128xbf16>, vector<128x384xbf16>, vector<8x384xf32> -> vector<8x384xf32>
    %178 = vector.extract_strided_slice %175 {offsets = [0, 0], sizes = [8, 128], strides = [1, 1]} : vector<8x384xf32> to vector<8x128xf32>
    %179 = vector.extract_strided_slice %177 {offsets = [0, 0], sizes = [8, 128], strides = [1, 1]} : vector<8x384xf32> to vector<8x128xf32>
    %180 = arith.addf %178, %179 : vector<8x128xf32>
    %181 = arith.negf %180 : vector<8x128xf32>
    %182 = math.exp %181 : vector<8x128xf32>
    %cst_52 = arith.constant 1.000000e+00 : f32
    %183 = vector.broadcast %cst_52 : f32 to vector<8x128xf32>
    %184 = arith.addf %183, %182 : vector<8x128xf32>
    %185 = arith.divf %183, %184 : vector<8x128xf32>
    %186 = vector.extract_strided_slice %175 {offsets = [0, 128], sizes = [8, 128], strides = [1, 1]} : vector<8x384xf32> to vector<8x128xf32>
    %187 = vector.extract_strided_slice %177 {offsets = [0, 128], sizes = [8, 128], strides = [1, 1]} : vector<8x384xf32> to vector<8x128xf32>
    %188 = arith.addf %186, %187 : vector<8x128xf32>
    %189 = arith.negf %188 : vector<8x128xf32>
    %190 = math.exp %189 : vector<8x128xf32>
    %cst_53 = arith.constant 1.000000e+00 : f32
    %191 = vector.broadcast %cst_53 : f32 to vector<8x128xf32>
    %192 = arith.addf %191, %190 : vector<8x128xf32>
    %193 = arith.divf %191, %192 : vector<8x128xf32>
    %194 = vector.extract_strided_slice %175 {offsets = [0, 256], sizes = [8, 128], strides = [1, 1]} : vector<8x384xf32> to vector<8x128xf32>
    %195 = vector.extract_strided_slice %177 {offsets = [0, 256], sizes = [8, 128], strides = [1, 1]} : vector<8x384xf32> to vector<8x128xf32>
    %196 = vector.broadcast %14 : vector<1x128xf32> to vector<8x128xf32>
    %197 = arith.addf %195, %196 : vector<8x128xf32>
    %198 = arith.mulf %185, %197 : vector<8x128xf32>
    %199 = arith.addf %194, %198 : vector<8x128xf32>
    %200 = math.tanh %199 : vector<8x128xf32>
    %cst_54 = arith.constant 1.000000e+00 : f32
    %201 = vector.broadcast %cst_54 : f32 to vector<8x128xf32>
    %202 = arith.subf %201, %193 : vector<8x128xf32>
    %203 = arith.mulf %202, %200 : vector<8x128xf32>
    %204 = arith.mulf %193, %166 : vector<8x128xf32>
    %205 = arith.addf %203, %204 : vector<8x128xf32>
    %206 = arith.truncf %205 : vector<8x128xf32> to vector<8x128xbf16>
    %207 = arith.index_cast %c4_i32 : i32 to index
    %c0_55 = arith.constant 0 : index
    %c0_56 = arith.constant 0 : index
    %208 = vector.load %arg7[%207, %c0_55, %c0_56] : memref<8x8x128xbf16, #tpu.memory_space<vmem>>, vector<1x8x128xbf16>
    %209 = vector.shape_cast %208 : vector<1x8x128xbf16> to vector<8x128xbf16>
    %210 = vector.shape_cast %206 : vector<8x128xbf16> to vector<1x8x128xbf16>
    tpu.vector_store %arg7[%207, %c0_55, %c0_56], %210 {strides = array<i32>} : memref<8x8x128xbf16, #tpu.memory_space<vmem>>, vector<1x8x128xbf16>,
    %c5_i32 = arith.constant 5 : i32
    %211 = arith.index_cast %c5_i32 : i32 to index
    %c0_57 = arith.constant 0 : index
    %c0_58 = arith.constant 0 : index
    %212 = vector.load %arg9[%211, %c0_57, %c0_58] : memref<8x8x384xbf16, #tpu.memory_space<vmem>>, vector<1x8x384xbf16>
    %213 = vector.shape_cast %212 : vector<1x8x384xbf16> to vector<8x384xbf16>
    %214 = arith.extf %213 : vector<8x384xbf16> to vector<8x384xf32>
    %215 = arith.truncf %205 : vector<8x128xf32> to vector<8x128xbf16>
    %cst_59 = arith.constant dense<0.000000e+00> : vector<8x384xf32>
    %216 = tpu.matmul %215, %13, %cst_59 {dimension_numbers = #tpu.dot_dimension_numbers<[1], [0], [0], [1], [0, 0, 1, 1], [], []>} : vector<8x128xbf16>, vector<128x384xbf16>, vector<8x384xf32> -> vector<8x384xf32>
    %217 = vector.extract_strided_slice %214 {offsets = [0, 0], sizes = [8, 128], strides = [1, 1]} : vector<8x384xf32> to vector<8x128xf32>
    %218 = vector.extract_strided_slice %216 {offsets = [0, 0], sizes = [8, 128], strides = [1, 1]} : vector<8x384xf32> to vector<8x128xf32>
    %219 = arith.addf %217, %218 : vector<8x128xf32>
    %220 = arith.negf %219 : vector<8x128xf32>
    %221 = math.exp %220 : vector<8x128xf32>
    %cst_60 = arith.constant 1.000000e+00 : f32
    %222 = vector.broadcast %cst_60 : f32 to vector<8x128xf32>
    %223 = arith.addf %222, %221 : vector<8x128xf32>
    %224 = arith.divf %222, %223 : vector<8x128xf32>
    %225 = vector.extract_strided_slice %214 {offsets = [0, 128], sizes = [8, 128], strides = [1, 1]} : vector<8x384xf32> to vector<8x128xf32>
    %226 = vector.extract_strided_slice %216 {offsets = [0, 128], sizes = [8, 128], strides = [1, 1]} : vector<8x384xf32> to vector<8x128xf32>
    %227 = arith.addf %225, %226 : vector<8x128xf32>
    %228 = arith.negf %227 : vector<8x128xf32>
    %229 = math.exp %228 : vector<8x128xf32>
    %cst_61 = arith.constant 1.000000e+00 : f32
    %230 = vector.broadcast %cst_61 : f32 to vector<8x128xf32>
    %231 = arith.addf %230, %229 : vector<8x128xf32>
    %232 = arith.divf %230, %231 : vector<8x128xf32>
    %233 = vector.extract_strided_slice %214 {offsets = [0, 256], sizes = [8, 128], strides = [1, 1]} : vector<8x384xf32> to vector<8x128xf32>
    %234 = vector.extract_strided_slice %216 {offsets = [0, 256], sizes = [8, 128], strides = [1, 1]} : vector<8x384xf32> to vector<8x128xf32>
    %235 = vector.broadcast %14 : vector<1x128xf32> to vector<8x128xf32>
    %236 = arith.addf %234, %235 : vector<8x128xf32>
    %237 = arith.mulf %224, %236 : vector<8x128xf32>
    %238 = arith.addf %233, %237 : vector<8x128xf32>
    %239 = math.tanh %238 : vector<8x128xf32>
    %cst_62 = arith.constant 1.000000e+00 : f32
    %240 = vector.broadcast %cst_62 : f32 to vector<8x128xf32>
    %241 = arith.subf %240, %232 : vector<8x128xf32>
    %242 = arith.mulf %241, %239 : vector<8x128xf32>
    %243 = arith.mulf %232, %205 : vector<8x128xf32>
    %244 = arith.addf %242, %243 : vector<8x128xf32>
    %245 = arith.truncf %244 : vector<8x128xf32> to vector<8x128xbf16>
    %246 = arith.index_cast %c5_i32 : i32 to index
    %c0_63 = arith.constant 0 : index
    %c0_64 = arith.constant 0 : index
    %247 = vector.load %arg7[%246, %c0_63, %c0_64] : memref<8x8x128xbf16, #tpu.memory_space<vmem>>, vector<1x8x128xbf16>
    %248 = vector.shape_cast %247 : vector<1x8x128xbf16> to vector<8x128xbf16>
    %249 = vector.shape_cast %245 : vector<8x128xbf16> to vector<1x8x128xbf16>
    tpu.vector_store %arg7[%246, %c0_63, %c0_64], %249 {strides = array<i32>} : memref<8x8x128xbf16, #tpu.memory_space<vmem>>, vector<1x8x128xbf16>,
    %c6_i32 = arith.constant 6 : i32
    %250 = arith.index_cast %c6_i32 : i32 to index
    %c0_65 = arith.constant 0 : index
    %c0_66 = arith.constant 0 : index
    %251 = vector.load %arg9[%250, %c0_65, %c0_66] : memref<8x8x384xbf16, #tpu.memory_space<vmem>>, vector<1x8x384xbf16>
    %252 = vector.shape_cast %251 : vector<1x8x384xbf16> to vector<8x384xbf16>
    %253 = arith.extf %252 : vector<8x384xbf16> to vector<8x384xf32>
    %254 = arith.truncf %244 : vector<8x128xf32> to vector<8x128xbf16>
    %cst_67 = arith.constant dense<0.000000e+00> : vector<8x384xf32>
    %255 = tpu.matmul %254, %13, %cst_67 {dimension_numbers = #tpu.dot_dimension_numbers<[1], [0], [0], [1], [0, 0, 1, 1], [], []>} : vector<8x128xbf16>, vector<128x384xbf16>, vector<8x384xf32> -> vector<8x384xf32>
    %256 = vector.extract_strided_slice %253 {offsets = [0, 0], sizes = [8, 128], strides = [1, 1]} : vector<8x384xf32> to vector<8x128xf32>
    %257 = vector.extract_strided_slice %255 {offsets = [0, 0], sizes = [8, 128], strides = [1, 1]} : vector<8x384xf32> to vector<8x128xf32>
    %258 = arith.addf %256, %257 : vector<8x128xf32>
    %259 = arith.negf %258 : vector<8x128xf32>
    %260 = math.exp %259 : vector<8x128xf32>
    %cst_68 = arith.constant 1.000000e+00 : f32
    %261 = vector.broadcast %cst_68 : f32 to vector<8x128xf32>
    %262 = arith.addf %261, %260 : vector<8x128xf32>
    %263 = arith.divf %261, %262 : vector<8x128xf32>
    %264 = vector.extract_strided_slice %253 {offsets = [0, 128], sizes = [8, 128], strides = [1, 1]} : vector<8x384xf32> to vector<8x128xf32>
    %265 = vector.extract_strided_slice %255 {offsets = [0, 128], sizes = [8, 128], strides = [1, 1]} : vector<8x384xf32> to vector<8x128xf32>
    %266 = arith.addf %264, %265 : vector<8x128xf32>
    %267 = arith.negf %266 : vector<8x128xf32>
    %268 = math.exp %267 : vector<8x128xf32>
    %cst_69 = arith.constant 1.000000e+00 : f32
    %269 = vector.broadcast %cst_69 : f32 to vector<8x128xf32>
    %270 = arith.addf %269, %268 : vector<8x128xf32>
    %271 = arith.divf %269, %270 : vector<8x128xf32>
    %272 = vector.extract_strided_slice %253 {offsets = [0, 256], sizes = [8, 128], strides = [1, 1]} : vector<8x384xf32> to vector<8x128xf32>
    %273 = vector.extract_strided_slice %255 {offsets = [0, 256], sizes = [8, 128], strides = [1, 1]} : vector<8x384xf32> to vector<8x128xf32>
    %274 = vector.broadcast %14 : vector<1x128xf32> to vector<8x128xf32>
    %275 = arith.addf %273, %274 : vector<8x128xf32>
    %276 = arith.mulf %263, %275 : vector<8x128xf32>
    %277 = arith.addf %272, %276 : vector<8x128xf32>
    %278 = math.tanh %277 : vector<8x128xf32>
    %cst_70 = arith.constant 1.000000e+00 : f32
    %279 = vector.broadcast %cst_70 : f32 to vector<8x128xf32>
    %280 = arith.subf %279, %271 : vector<8x128xf32>
    %281 = arith.mulf %280, %278 : vector<8x128xf32>
    %282 = arith.mulf %271, %244 : vector<8x128xf32>
    %283 = arith.addf %281, %282 : vector<8x128xf32>
    %284 = arith.truncf %283 : vector<8x128xf32> to vector<8x128xbf16>
    %285 = arith.index_cast %c6_i32 : i32 to index
    %c0_71 = arith.constant 0 : index
    %c0_72 = arith.constant 0 : index
    %286 = vector.load %arg7[%285, %c0_71, %c0_72] : memref<8x8x128xbf16, #tpu.memory_space<vmem>>, vector<1x8x128xbf16>
    %287 = vector.shape_cast %286 : vector<1x8x128xbf16> to vector<8x128xbf16>
    %288 = vector.shape_cast %284 : vector<8x128xbf16> to vector<1x8x128xbf16>
    tpu.vector_store %arg7[%285, %c0_71, %c0_72], %288 {strides = array<i32>} : memref<8x8x128xbf16, #tpu.memory_space<vmem>>, vector<1x8x128xbf16>,
    %c7_i32 = arith.constant 7 : i32
    %289 = arith.index_cast %c7_i32 : i32 to index
    %c0_73 = arith.constant 0 : index
    %c0_74 = arith.constant 0 : index
    %290 = vector.load %arg9[%289, %c0_73, %c0_74] : memref<8x8x384xbf16, #tpu.memory_space<vmem>>, vector<1x8x384xbf16>
    %291 = vector.shape_cast %290 : vector<1x8x384xbf16> to vector<8x384xbf16>
    %292 = arith.extf %291 : vector<8x384xbf16> to vector<8x384xf32>
    %293 = arith.truncf %283 : vector<8x128xf32> to vector<8x128xbf16>
    %cst_75 = arith.constant dense<0.000000e+00> : vector<8x384xf32>
    %294 = tpu.matmul %293, %13, %cst_75 {dimension_numbers = #tpu.dot_dimension_numbers<[1], [0], [0], [1], [0, 0, 1, 1], [], []>} : vector<8x128xbf16>, vector<128x384xbf16>, vector<8x384xf32> -> vector<8x384xf32>
    %295 = vector.extract_strided_slice %292 {offsets = [0, 0], sizes = [8, 128], strides = [1, 1]} : vector<8x384xf32> to vector<8x128xf32>
    %296 = vector.extract_strided_slice %294 {offsets = [0, 0], sizes = [8, 128], strides = [1, 1]} : vector<8x384xf32> to vector<8x128xf32>
    %297 = arith.addf %295, %296 : vector<8x128xf32>
    %298 = arith.negf %297 : vector<8x128xf32>
    %299 = math.exp %298 : vector<8x128xf32>
    %cst_76 = arith.constant 1.000000e+00 : f32
    %300 = vector.broadcast %cst_76 : f32 to vector<8x128xf32>
    %301 = arith.addf %300, %299 : vector<8x128xf32>
    %302 = arith.divf %300, %301 : vector<8x128xf32>
    %303 = vector.extract_strided_slice %292 {offsets = [0, 128], sizes = [8, 128], strides = [1, 1]} : vector<8x384xf32> to vector<8x128xf32>
    %304 = vector.extract_strided_slice %294 {offsets = [0, 128], sizes = [8, 128], strides = [1, 1]} : vector<8x384xf32> to vector<8x128xf32>
    %305 = arith.addf %303, %304 : vector<8x128xf32>
    %306 = arith.negf %305 : vector<8x128xf32>
    %307 = math.exp %306 : vector<8x128xf32>
    %cst_77 = arith.constant 1.000000e+00 : f32
    %308 = vector.broadcast %cst_77 : f32 to vector<8x128xf32>
    %309 = arith.addf %308, %307 : vector<8x128xf32>
    %310 = arith.divf %308, %309 : vector<8x128xf32>
    %311 = vector.extract_strided_slice %292 {offsets = [0, 256], sizes = [8, 128], strides = [1, 1]} : vector<8x384xf32> to vector<8x128xf32>
    %312 = vector.extract_strided_slice %294 {offsets = [0, 256], sizes = [8, 128], strides = [1, 1]} : vector<8x384xf32> to vector<8x128xf32>
    %313 = vector.broadcast %14 : vector<1x128xf32> to vector<8x128xf32>
    %314 = arith.addf %312, %313 : vector<8x128xf32>
    %315 = arith.mulf %302, %314 : vector<8x128xf32>
    %316 = arith.addf %311, %315 : vector<8x128xf32>
    %317 = math.tanh %316 : vector<8x128xf32>
    %cst_78 = arith.constant 1.000000e+00 : f32
    %318 = vector.broadcast %cst_78 : f32 to vector<8x128xf32>
    %319 = arith.subf %318, %310 : vector<8x128xf32>
    %320 = arith.mulf %319, %317 : vector<8x128xf32>
    %321 = arith.mulf %310, %283 : vector<8x128xf32>
    %322 = arith.addf %320, %321 : vector<8x128xf32>
    %323 = arith.truncf %322 : vector<8x128xf32> to vector<8x128xbf16>
    %324 = arith.index_cast %c7_i32 : i32 to index
    %c0_79 = arith.constant 0 : index
    %c0_80 = arith.constant 0 : index
    %325 = vector.load %arg7[%324, %c0_79, %c0_80] : memref<8x8x128xbf16, #tpu.memory_space<vmem>>, vector<1x8x128xbf16>
    %326 = vector.shape_cast %325 : vector<1x8x128xbf16> to vector<8x128xbf16>
    %327 = vector.shape_cast %323 : vector<8x128xbf16> to vector<1x8x128xbf16>
    tpu.vector_store %arg7[%324, %c0_79, %c0_80], %327 {strides = array<i32>} : memref<8x8x128xbf16, #tpu.memory_space<vmem>>, vector<1x8x128xbf16>,
    %c8_i32 = arith.constant 8 : i32
    %c0_81 = arith.constant 0 : index
    %c0_82 = arith.constant 0 : index
    %328 = vector.load %arg8[%c0_81, %c0_82] : memref<8x128xf32, #tpu.memory_space<vmem>>, vector<8x128xf32>
    tpu.vector_store %arg8[%c0_81, %c0_82], %322 {strides = array<i32>} : memref<8x128xf32, #tpu.memory_space<vmem>>, vector<8x128xf32>,
    return
  }
  func.func @transform_0(%arg0: i32, %arg1: i32) -> (i32, i32, i32) {
    %c0_i32 = arith.constant 0 : i32
    %c0_i32_0 = arith.constant 0 : i32
    return %arg1, %arg0, %c0_i32 : i32, i32, i32
  }
  func.func @transform_1(%arg0: i32, %arg1: i32) -> (i32, i32) {
    %c0_i32 = arith.constant 0 : i32
    %c0_i32_0 = arith.constant 0 : i32
    %c0_i32_1 = arith.constant 0 : i32
    return %c0_i32, %c0_i32_0 : i32, i32
  }
  func.func @transform_2(%arg0: i32, %arg1: i32) -> (i32, i32) {
    %c0_i32 = arith.constant 0 : i32
    %c0_i32_0 = arith.constant 0 : i32
    %c0_i32_1 = arith.constant 0 : i32
    return %c0_i32, %c0_i32_0 : i32, i32
  }
  func.func @transform_3(%arg0: i32, %arg1: i32) -> (i32, i32) {
    %c0_i32 = arith.constant 0 : i32
    %c0_i32_0 = arith.constant 0 : i32
    %c0_i32_1 = arith.constant 0 : i32
    return %c0_i32, %c0_i32_0 : i32, i32
  }
  func.func @transform_4(%arg0: i32, %arg1: i32) -> (i32, i32) {
    %c0_i32 = arith.constant 0 : i32
    %c0_i32_0 = arith.constant 0 : i32
    %c0_i32_1 = arith.constant 0 : i32
    return %c0_i32, %c0_i32_0 : i32, i32
  }
  func.func @transform_5(%arg0: i32, %arg1: i32) -> (i32, i32, i32) {
    %c0_i32 = arith.constant 0 : i32
    %c0_i32_0 = arith.constant 0 : i32
    return %arg1, %arg0, %c0_i32 : i32, i32, i32
  }
}

</mosaic_0001>

<bundles_post_ra>
// kernel: tpu_custom_call.1
= control target key start
LH: loop header
LB: loop body
LE: loop exit
PB: predicated region body
PF: predicated region fallthrough
CT: control target
= control target key end

     0   :  { %10 = vsyncpa [#allocation5], 0  ;;  %s2823_s0 = inlined_call_operand.hbm [shape: bf16[8,8,128], index: 0, kind: input, shape index: {}]   ;;  %s2824_s1 = inlined_call_operand.hbm [shape: bf16[128,384], index: 1, kind: input, shape index: {}]   ;;  %s2825_s2 = inlined_call_operand.hbm [shape: bf16[128,384], index: 2, kind: input, shape index: {}]   ;;  %s2826_s3 = inlined_call_operand.vmem [shape: f32[1,384], index: 3, kind: input, shape index: {}]   ;;  %s2827_s4 = inlined_call_operand.vmem [shape: f32[1,128], index: 4, kind: input, shape index: {}]   ;;  %s2828_s5 = inlined_call_operand.hbm [shape: bf16[8,8,128], index: 5, kind: output, shape index: {}]  }
   0x1   :  { %11 = vsyncpa [#allocation8], 0 }
   0x2   :  { %12 = vsyncpa [#allocation6], 0  ;;  %s2264_s18 = smov [#allocation7]   ;;  %s2170_s22 = scalar_lea.hbm %s2824_s1, 3072 }
   0x3   :  { %s30_s19 = sshll.u32 %s2264_s18, 4  ;;  %p2171_p0 = scmp.ne.s32.totalorder %s2824_s1, %s2170_s22  ;;  %s31_s19 = int_to_ptr.vmem [resolvable:$true] %s30_s19 }
   0x4   :  { %p2174_p1 = scmp.lt.u32.totalorder %s2170_s22, %s2824_s1 }
   0x6   :  { %p2176_p2 = pnand %p2174_p1, %p2171_p0 }
   0x8   :  { %2179 = shalt.err (!%p2176_p2)
}
   0x9   :  { %s2180_s27 = scalar_lea.vmem %s31_s19, 3072  ;;  %p2185_p4 = scmp.lt.s32.totalorder %s31_s19, %s31_s19 }
   0xa   :  { %p2181_p3 = scmp.ne.s32.totalorder %s31_s19, %s2180_s27  ;;  %p2186_p5 = scmp.lt.s32.totalorder %s2180_s27, %s2180_s27 }
   0xc   :  { %p2187_p6 = por %p2186_p5, %p2185_p4 }
   0xe   :  { %p2188_p7 = pnand %p2187_p6, %p2181_p3 }
  0x10   :  { %2191 = shalt.err (!%p2188_p7)
}
  0x11   :  { %s2265_s28 = smov 192   ;;  %s2266_s29 = smov 12  }
  0x12   :  { %36 = dma.hbm_to_vmem [thread:$0]  %s2824_s1, 3072, %s31_s19, [#allocation8], %s2265_s28, %s2265_s28, %s2266_s29  }
  0x13   :  { %s2267_s7 = smov [#allocation4]   ;;  %s2192_s11 = scalar_lea.hbm %s2823_s0, 512 }
  0x14   :  { %s18_s8 = sshll.u32 %s2267_s7, 4  ;;  %p2193_p8 = scmp.ne.s32.totalorder %s2823_s0, %s2192_s11  ;;  %s19_s8 = int_to_ptr.vmem [resolvable:$true] %s18_s8 }
  0x15   :  { %p2196_p9 = scmp.lt.u32.totalorder %s2192_s11, %s2823_s0 }
  0x17   :  { %p2198_p10 = pnand %p2196_p9, %p2193_p8 }
  0x19   :  { %2201 = shalt.err (!%p2198_p10)
}
  0x1a   :  { %s2202_s16 = scalar_lea.vmem %s19_s8, 512  ;;  %p2207_p12 = scmp.lt.s32.totalorder %s19_s8, %s19_s8 }
  0x1b   :  { %p2203_p11 = scmp.ne.s32.totalorder %s19_s8, %s2202_s16  ;;  %p2208_p13 = scmp.lt.s32.totalorder %s2202_s16, %s2202_s16 }
  0x1d   :  { %p2209_p0 = por %p2208_p13, %p2207_p12 }
  0x1f   :  { %p2210_p1 = pnand %p2209_p0, %p2203_p11 }
  0x21   :  { %2213 = shalt.err (!%p2210_p1)
}
  0x22   :  { %s2268_s1 = smov 64   ;;  %s2269_s17 = smov 4  }
  0x23   :  { %24 = dma.hbm_to_vmem [thread:$0]  %s2823_s0, 512, %s19_s8, [#allocation5], %s2268_s1, %s2268_s1, %s2269_s17  }
  0x24   :  { %s2270_s20 = smov [#allocation9]   ;;  %s2214_s24 = scalar_lea.hbm %s2825_s2, 3072 }
  0x25   :  { %s42_s21 = sshll.u32 %s2270_s20, 4  ;;  %p2215_p2 = scmp.ne.s32.totalorder %s2825_s2, %s2214_s24  ;;  %s43_s21 = int_to_ptr.vmem [resolvable:$true] %s42_s21 }
  0x26   :  { %p2218_p3 = scmp.lt.u32.totalorder %s2214_s24, %s2825_s2 }
  0x28   :  { %p2220_p4 = pnand %p2218_p3, %p2215_p2 }
  0x2a   :  { %2223 = shalt.err (!%p2220_p4)
}
  0x2b   :  { %s2224_s6 = scalar_lea.vmem %s43_s21, 3072  ;;  %p2229_p6 = scmp.lt.s32.totalorder %s43_s21, %s43_s21 }
  0x2c   :  { %p2225_p5 = scmp.ne.s32.totalorder %s43_s21, %s2224_s6  ;;  %p2230_p7 = scmp.lt.s32.totalorder %s2224_s6, %s2224_s6 }
  0x2e   :  { %p2231_p8 = por %p2230_p7, %p2229_p6 }
  0x30   :  { %p2232_p9 = pnand %p2231_p8, %p2225_p5 }
  0x32   :  { %2235 = shalt.err (!%p2232_p9)
}
  0x33   :  { %48 = dma.hbm_to_vmem [thread:$0]  %s2825_s2, 3072, %s43_s21, [#allocation8], %s2265_s28, %s2265_s28, %s2266_s29  }
  0x34   :  { %2258 = dma.done.wait [#allocation5], 512  }
  0x35   :  { %2259 = vsyncadd [#allocation5], 4294966784 }
  0x36   :  { %2260 = dma.done.wait [#allocation8], 6144  }
  0x37   :  { %2261 = vsyncadd [#allocation8], 4294961152  ;;  %v2271_v0 = vmov 0   ;;  %v1998_v1 = vld [vmem:[#allocation7 + $0x4] ss:$12 sps:$4 sm:$0xff]   ;;  %v2033_v31 = vld [vmem:[#allocation4 + $0x8] sm:$0xff]   ;;  %v110_v55 = vlaneseq }
  0x38   :  { %309 = vmatprep.mubr.bf16.mxu0 %v2271_v0  ;;  %v2000_v2 = vld [vmem:[#allocation7] ss:$12 sps:$4 sm:$0xff]   ;;  %277 = vmatprep.subr.bf16.mxu0 %v1998_v1  ;;  %v2001_v3 = vld [vmem:[#allocation7 + $0x1c] ss:$12 sps:$4 sm:$0xff]   ;;  %v2003_v4 = vld [vmem:[#allocation7 + $0x18] ss:$12 sps:$4 sm:$0xff]  }
  0x39   :  { %278 = vmatpush1.bf16.msra.mxu0 %v2000_v2  ;;  %v2004_v5 = vld [vmem:[#allocation7 + $0x34] ss:$12 sps:$4 sm:$0xff]   ;;  %v2006_v6 = vld [vmem:[#allocation7 + $0x30] ss:$12 sps:$4 sm:$0xff]   ;;  %v2007_v7 = vld [vmem:[#allocation7 + $0x4c] ss:$12 sps:$4 sm:$0xff]  }
  0x3a   :  { %279 = vmatprep.subr.bf16.mxu0 %v2001_v3  ;;  %v2018_v8 = vld [vmem:[#allocation7 + $0x8] ss:$12 sps:$4 sm:$0xff]   ;;  %v2010_v10 = vld [vmem:[#allocation7 + $0x64] ss:$12 sps:$4 sm:$0xff]   ;;  %v2022_v11 = vld [vmem:[#allocation7 + $0x20] ss:$12 sps:$4 sm:$0xff]  }
  0x3b   :  { %v2009_v9 = vld [vmem:[#allocation7 + $0x48] ss:$12 sps:$4 sm:$0xff]   ;;  %1802 = vmatprep.subr.bf16.mxu1 %v2018_v8  ;;  %v2024_v12 = vld [vmem:[#allocation4] sm:$0xff]   ;;  %v2029_v16 = vld [vmem:[#allocation7 + $0x50] ss:$12 sps:$4 sm:$0xff]   ;;  %v2272_v34 = vmov 0.0  }
  0x3c   :  { %1803 = vmatpush3.bf16.msra.mxu1 %v2018_v8  ;;  %v2025_v13 = vld [vmem:[#allocation7 + $0x38] ss:$12 sps:$4 sm:$0xff]   ;;  %v2012_v14 = vld [vmem:[#allocation7 + $0x60] ss:$12 sps:$4 sm:$0xff]   ;;  %1818 = vmatprep.mubr.bf16.mxu1 %v2024_v12  ;;  %v2013_v15 = vld [vmem:[#allocation7 + $0x7c] ss:$12 sps:$4 sm:$0xff]  }
  0x3d   :  { %280 = vmatpush1.bf16.msra.mxu0 %v2003_v4  ;;  %1804 = vmatprep.subr.bf16.mxu1 %v2022_v11  ;;  %v2015_v17 = vld [vmem:[#allocation7 + $0x78] ss:$12 sps:$4 sm:$0xff]   ;;  %v2016_v18 = vld [vmem:[#allocation7 + $0x94] ss:$12 sps:$4 sm:$0xff]   ;;  %v2019_v20 = vld [vmem:[#allocation7 + $0x90] ss:$12 sps:$4 sm:$0xff]  }
  0x3e   :  { %281 = vmatprep.subr.bf16.mxu0 %v2004_v5  ;;  %v2034_v19 = vld [vmem:[#allocation7 + $0x68] ss:$12 sps:$4 sm:$0xff]   ;;  %v2020_v21 = vld [vmem:[#allocation7 + $0xac] ss:$12 sps:$4 sm:$0xff]   ;;  %v2352_v24 = vld [vmem:[#allocation9 + $0x4] ss:$12 sps:$4 sm:$0xff]  }
  0x3f   :  { %v2038_v22 = vld [vmem:[#allocation7 + $0x80] ss:$12 sps:$4 sm:$0xff]   ;;  %v2023_v23 = vld [vmem:[#allocation7 + $0xa8] ss:$12 sps:$4 sm:$0xff]   ;;  %v2043_v25 = vld [vmem:[#allocation7 + $0x98] ss:$12 sps:$4 sm:$0xff]  }
  0x40   :  { %1805 = vmatpush3.bf16.msra.mxu1 %v2022_v11  ;;  %v2354_v26 = vld [vmem:[#allocation9] ss:$12 sps:$4 sm:$0xff]   ;;  %v2357_v27 = vld [vmem:[#allocation9 + $0x1c] ss:$12 sps:$4 sm:$0xff]   ;;  %v2360_v29 = vld [vmem:[#allocation9 + $0x18] ss:$12 sps:$4 sm:$0xff]  }
  0x41   :  { %282 = vmatpush1.bf16.msra.mxu0 %v2006_v6  ;;  %1806 = vmatprep.subr.bf16.mxu1 %v2025_v13  ;;  %v2047_v28 = vld [vmem:[#allocation7 + $0xb0] ss:$12 sps:$4 sm:$0xff]   ;;  %v2364_v30 = vld [vmem:[#allocation9 + $0x34] ss:$12 sps:$4 sm:$0xff]   ;;  %v2370_v33 = vld [vmem:[#allocation9 + $0x4c] ss:$12 sps:$4 sm:$0xff]  }
  0x42   :  { %283 = vmatprep.subr.bf16.mxu0 %v2007_v7  ;;  %v2367_v32 = vld [vmem:[#allocation9 + $0x30] ss:$12 sps:$4 sm:$0xff]   ;;  %v2373_v35 = vld [vmem:[#allocation9 + $0x8] ss:$12 sps:$4 sm:$0xff]   ;;  %v2383_v39 = vld [vmem:[#allocation9 + $0x20] ss:$12 sps:$4 sm:$0xff]  }
  0x43   :  { %v2376_v36 = vld [vmem:[#allocation9 + $0x48] ss:$12 sps:$4 sm:$0xff]   ;;  %v2380_v38 = vld [vmem:[#allocation9 + $0x64] ss:$12 sps:$4 sm:$0xff]   ;;  %v2387_v40 = vld [vmem:[#allocation9 + $0x60] ss:$12 sps:$4 sm:$0xff]  }
  0x44   :  { %1807 = vmatpush3.bf16.msra.mxu1 %v2025_v13  ;;  %v2042_v37 = vld [vmem:[#allocation4 + $0x10] sm:$0xff]   ;;  %v2390_v41 = vld [vmem:[#allocation9 + $0x7c] ss:$12 sps:$4 sm:$0xff]   ;;  %v2393_v42 = vld [vmem:[#allocation9 + $0x38] ss:$12 sps:$4 sm:$0xff]   ;;  %vm2273_vm0 = vmmov 0  }
  0x45   :  { %284 = vmatpush1.bf16.msra.mxu0 %v2009_v9  ;;  %1808 = vmatprep.subr.bf16.mxu1 %v2029_v16  ;;  %v2051_v43 = vld [vmem:[#allocation4 + $0x18] sm:$0xff]   ;;  %v2401_v45 = vld [vmem:[#allocation9 + $0x94] ss:$12 sps:$4 sm:$0xff]   ;;  %v2274_v53 = vmov 0.0|0.0   ;;  %v111_v56 = vshrl.u32 %v110_v55, 7 }
  0x46   :  { %285 = vmatprep.subr.bf16.mxu0 %v2010_v10  ;;  %v2397_v44 = vld [vmem:[#allocation9 + $0x78] ss:$12 sps:$4 sm:$0xff]   ;;  %v2404_v46 = vld [vmem:[#allocation9 + $0x50] ss:$12 sps:$4 sm:$0xff]   ;;  %v2416_v49 = vld [vmem:[#allocation9 + $0x68] ss:$12 sps:$4 sm:$0xff]  }
  0x47   :  { %v2410_v47 = vld [vmem:[#allocation9 + $0x90] ss:$12 sps:$4 sm:$0xff]   ;;  %v2413_v48 = vld [vmem:[#allocation9 + $0xac] ss:$12 sps:$4 sm:$0xff]   ;;  %v2420_v50 = vld [vmem:[#allocation9 + $0xa8] ss:$12 sps:$4 sm:$0xff]  }
  0x48   :  { %1809 = vmatpush3.bf16.msra.mxu1 %v2029_v16  ;;  %v2425_v51 = vld [vmem:[#allocation9 + $0x80] ss:$12 sps:$4 sm:$0xff]   ;;  %v2431_v52 = vld [vmem:[#allocation9 + $0x98] ss:$12 sps:$4 sm:$0xff]   ;;  %v2438_v54 = vld [vmem:[#allocation9 + $0xb0] ss:$12 sps:$4 sm:$0xff]  }
  0x49   :  { %286 = vmatpush1.bf16.msra.mxu0 %v2012_v14  ;;  %1810 = vmatprep.subr.bf16.mxu1 %v2034_v19  ;;  %v112_v57 = vsub.s32 0, %v111_v56  ;;  %v108_v58 = vld [vmem:[%s2826_s3] sm:$0x7]  ;;  %v116_v59 = vsub.s32 1, %v111_v56  ;;  %v120_v6 = vsub.s32 2, %v111_v56 }
  0x4a   :  { %287 = vmatprep.subr.bf16.mxu0 %v2013_v15 }
  0x4b   :  { %v2478_v60 = vrot.slane %v108_v58, %v112_v57  ;;  %v2480_v61 = vrot.slane %v108_v58, %v116_v59  ;;  %v121_v10 = vrot.slane %v108_v58, %v120_v6 }
  0x4c   :  { %1811 = vmatpush3.bf16.msra.mxu1 %v2034_v19 }
  0x4d   :  { %288 = vmatpush1.bf16.msra.mxu0 %v2015_v17  ;;  %1812 = vmatprep.subr.bf16.mxu1 %v2038_v22 }
  0x4e   :  { %289 = vmatprep.subr.bf16.mxu0 %v2016_v18 }
  0x50   :  { %1813 = vmatpush3.bf16.msra.mxu1 %v2038_v22 }
  0x51   :  { %290 = vmatpush1.bf16.msra.mxu0 %v2019_v20  ;;  %1814 = vmatprep.subr.bf16.mxu1 %v2043_v25 }
  0x52   :  { %291 = vmatprep.subr.bf16.mxu0 %v2020_v21 }
  0x54   :  { %1815 = vmatpush3.bf16.msra.mxu1 %v2043_v25 }
  0x55   :  { %292 = vmatpush1.bf16.msra.mxu0 %v2023_v23  ;;  %1816 = vmatprep.subr.bf16.mxu1 %v2047_v28 }
  0x56   :  { %703 = vmatprep.subr.bf16.mxu0 %v2352_v24 }
  0x58   :  { %310 = vmatmul.mubr.bf16.vlgmr.msra.gmra.mrb[0].mxu0 %v2024_v12  ;;  %1817 = vmatpush3.bf16.msra.mxu1 %v2047_v28 }
  0x59   :  { %704 = vmatpush1.bf16.msra.mxu0 %v2354_v26  ;;  %319 = vmatprep.mubr.bf16.mxu0 %v2271_v0 }
  0x5a   :  { %705 = vmatprep.subr.bf16.mxu0 %v2357_v27  ;;  %1826 = vmatprep.subr.bf16.mxu1 %v2272_v34 }
  0x5b   :  { %1819 = vmatmul.mubr.bf16.vlgmr.msra.gmra.mrb[0].mxu1 %v2033_v31 }
  0x5c   :  { %1827 = vmatpush3.bf16.msra.mxu1 %v2373_v35  ;;  %1822 = vmatprep.mubr.bf16.mxu1 %v2042_v37 }
  0x5d   :  { %706 = vmatpush1.bf16.msra.mxu0 %v2360_v29  ;;  %1828 = vmatprep.subr.bf16.mxu1 %v2272_v34 }
  0x5e   :  { %707 = vmatprep.subr.bf16.mxu0 %v2364_v30 }
  0x60   :  { %320 = vmatmul.mubr.bf16.gmra.mrb[4].mxu0 %v2033_v31  ;;  %1829 = vmatpush3.bf16.msra.mxu1 %v2383_v39 }
  0x61   :  { %708 = vmatpush1.bf16.msra.mxu0 %v2367_v32  ;;  %329 = vmatprep.mubr.bf16.mxu0 %v2271_v0 }
  0x62   :  { %709 = vmatprep.subr.bf16.mxu0 %v2370_v33  ;;  %1830 = vmatprep.subr.bf16.mxu1 %v2272_v34 }
  0x63   :  { %1823 = vmatmul.mubr.bf16.gmra.mrb[4].mxu1 %v2051_v43 }
  0x64   :  { %1831 = vmatpush3.bf16.msra.mxu1 %v2393_v42  ;;  %1842 = vmatprep.mubr.msk.bf16.mxu1 %vm2273_vm0, %v2272_v34 }
  0x65   :  { %710 = vmatpush1.bf16.msra.mxu0 %v2376_v36  ;;  %1832 = vmatprep.subr.bf16.mxu1 %v2272_v34 }
  0x66   :  { %711 = vmatprep.subr.bf16.mxu0 %v2380_v38 }
  0x68   :  { %330 = vmatmul.mubr.bf16.gmra.mrb[8].mxu0 %v2042_v37  ;;  %1833 = vmatpush3.bf16.msra.mxu1 %v2404_v46 }
  0x69   :  { %712 = vmatpush1.bf16.msra.mxu0 %v2387_v40  ;;  %339 = vmatprep.mubr.bf16.mxu0 %v2271_v0 }
  0x6a   :  { %713 = vmatprep.subr.bf16.mxu0 %v2390_v41  ;;  %1834 = vmatprep.subr.bf16.mxu1 %v2272_v34 }
  0x6c   :  { %1835 = vmatpush3.bf16.msra.mxu1 %v2416_v49 }
  0x6d   :  { %714 = vmatpush1.bf16.msra.mxu0 %v2397_v44  ;;  %1836 = vmatprep.subr.bf16.mxu1 %v2272_v34 }
  0x6e   :  { %715 = vmatprep.subr.bf16.mxu0 %v2401_v45 }
  0x70   :  { %340 = vmatmul.mubr.bf16.gmra.mrb[12].mxu0 %v2051_v43  ;;  %1837 = vmatpush3.bf16.msra.mxu1 %v2425_v51 }
  0x71   :  { %716 = vmatpush1.bf16.msra.mxu0 %v2410_v47  ;;  %735 = vmatprep.mubr.bf16.mxu0 %v2271_v0 }
  0x72   :  { %717 = vmatprep.subr.bf16.mxu0 %v2413_v48  ;;  %1838 = vmatprep.subr.bf16.mxu1 %v2272_v34 }
  0x74   :  { %1839 = vmatpush3.bf16.msra.mxu1 %v2431_v52 }
  0x75   :  { %718 = vmatpush1.bf16.msra.mxu0 %v2420_v50  ;;  %1840 = vmatprep.subr.bf16.mxu1 %v2272_v34 }
  0x76   :  { %820 = vmatprep.subr.bf16.mxu0 %v2352_v24 }
  0x78   :  { %736 = vmatmul.mubr.bf16.vlgmr.msra.gmra.mrb[16].mxu0 %v2274_v53  ;;  %1841 = vmatpush3.bf16.msra.mxu1 %v2438_v54 }
  0x79   :  { %821 = vmatpush1.bf16.msra.mxu0 %v2354_v26  ;;  %852 = vmatprep.mubr.bf16.mxu0 %v2271_v0 }
  0x7a   :  { %822 = vmatprep.subr.bf16.mxu0 %v2357_v27  ;;  %1846 = vmatprep.subr.bf16.mxu1 %v2272_v34 }
  0x7b   :  { %1843 = vmatmul.mubr.bf16.vlgmr.msra.gmra.mrb[8].mxu1 %v2274_v53 }
  0x7c   :  { %1847 = vmatpush3.bf16.msra.mxu1 %v2373_v35  ;;  %1862 = vmatprep.mubr.msk.bf16.mxu1 %vm2273_vm0, %v2272_v34 }
  0x7d   :  { %823 = vmatpush1.bf16.msra.mxu0 %v2360_v29  ;;  %1848 = vmatprep.subr.bf16.mxu1 %v2272_v34 }
  0x7e   :  { %824 = vmatprep.subr.bf16.mxu0 %v2364_v30 }
  0x80   :  { %1849 = vmatpush3.bf16.msra.mxu1 %v2383_v39 }
  0x81   :  { %825 = vmatpush1.bf16.msra.mxu0 %v2367_v32  ;;  %1850 = vmatprep.subr.bf16.mxu1 %v2272_v34 }
  0x82   :  { %826 = vmatprep.subr.bf16.mxu0 %v2370_v33 }
  0x84   :  { %1851 = vmatpush3.bf16.msra.mxu1 %v2393_v42 }
  0x85   :  { %827 = vmatpush1.bf16.msra.mxu0 %v2376_v36  ;;  %1852 = vmatprep.subr.bf16.mxu1 %v2272_v34 }
  0x86   :  { %828 = vmatprep.subr.bf16.mxu0 %v2380_v38 }
  0x88   :  { %1853 = vmatpush3.bf16.msra.mxu1 %v2404_v46 }
  0x89   :  { %829 = vmatpush1.bf16.msra.mxu0 %v2387_v40  ;;  %1854 = vmatprep.subr.bf16.mxu1 %v2272_v34 }
  0x8a   :  { %830 = vmatprep.subr.bf16.mxu0 %v2390_v41 }
  0x8c   :  { %1855 = vmatpush3.bf16.msra.mxu1 %v2416_v49 }
  0x8d   :  { %831 = vmatpush1.bf16.msra.mxu0 %v2397_v44  ;;  %1856 = vmatprep.subr.bf16.mxu1 %v2272_v34 }
  0x8e   :  { %832 = vmatprep.subr.bf16.mxu0 %v2401_v45 }
  0x90   :  { %1857 = vmatpush3.bf16.msra.mxu1 %v2425_v51 }
  0x91   :  { %833 = vmatpush1.bf16.msra.mxu0 %v2410_v47  ;;  %1858 = vmatprep.subr.bf16.mxu1 %v2272_v34 }
  0x92   :  { %834 = vmatprep.subr.bf16.mxu0 %v2413_v48 }
  0x94   :  { %1859 = vmatpush3.bf16.msra.mxu1 %v2431_v52 }
  0x95   :  { %835 = vmatpush1.bf16.msra.mxu0 %v2420_v50  ;;  %1860 = vmatprep.subr.bf16.mxu1 %v2272_v34 }
  0x96   :  { %932 = vmatprep.subr.bf16.mxu0 %v2352_v24 }
  0x98   :  { %1861 = vmatpush3.bf16.msra.mxu1 %v2438_v54 }
  0x99   :  { %1866 = vmatprep.subr.bf16.mxu1 %v2272_v34 }
 0x12b   :  { %v311_v62 = vpop.f32.mrb[0].mxu0 }
 0x12c   :  { %v312_v63 = vadd.f32 %v311_v62, %v2478_v60  ;;  %v313_v1 = vpop.f32.mrb[1].mxu0 }
 0x12d   :  { %v314_v2 = vadd.f32 %v313_v1, %v2480_v61  ;;  %v315_v3 = vpop.f32.mrb[2].mxu0 }
 0x12e   :  { %v316_v4 = vadd.f32 %v315_v3, %v2478_v60  ;;  %v317_v5 = vpop.f32.mrb[3].mxu0  ;;  %v1820_v16 = vpop.f32.mrb[0].mxu1 }
 0x12f   :  { %v2485_v7 = vpack.c.bf16 %v314_v2, %v312_v63  ;;  %v318_v8 = vadd.f32 %v317_v5, %v2480_v61  ;;  %v393_v19 = vadd.f32 %v1820_v16, %v121_v10  ;;  %v384_v20 = vpop.f32.mrb[1].mxu1 }
 0x130   :  { %v385_v23 = vadd.f32 %v384_v20, %v121_v10  ;;  %v1821_v25 = vpop.f32.mrb[2].mxu1 }
 0x131   :  { %v2488_v9 = vpack.c.bf16 %v318_v8, %v316_v4  ;;  %v1707_v28 = vpack.c.bf16 %v393_v19, %v393_v19  ;;  %v396_v31 = vadd.f32 %v1821_v25, %v121_v10  ;;  %v387_v37 = vpop.f32.mrb[3].mxu1 }
 0x132   :  { %v1703_v53 = vpack.c.bf16 %v385_v23, %v385_v23  ;;  %v388_v55 = vadd.f32 %v387_v37, %v121_v10 }
 0x133   :  { %v321_v11 = vpop.f32.mrb[4].mxu0  ;;  %524 = vst [vmem:[#allocation3 + $0x20] sm:$0xf] %v1707_v28  ;;  %v1709_v56 = vpack.c.bf16 %v396_v31, %v396_v31 }
 0x134   :  { %v322_v12 = vadd.f32 %v321_v11, %v2478_v60  ;;  %v323_v13 = vpop.f32.mrb[5].mxu0  ;;  %520 = vst [vmem:[#allocation3 + $0x8] sm:$0xf] %v1703_v53  ;;  %v1705_v58 = vpack.c.bf16 %v388_v55, %v388_v55 }
 0x135   :  { %v324_v14 = vadd.f32 %v323_v13, %v2480_v61  ;;  %v325_v15 = vpop.f32.mrb[6].mxu0  ;;  %526 = vst [vmem:[#allocation3 + $0x2c] sm:$0xf] %v1709_v56 }
 0x136   :  { %v326_v17 = vadd.f32 %v325_v15, %v2478_v60  ;;  %v327_v18 = vpop.f32.mrb[7].mxu0  ;;  %522 = vst [vmem:[#allocation3 + $0x14] sm:$0xf] %v1705_v58  ;;  %v1824_v2 = vpop.f32.mrb[4].mxu1  ;;  %v571_v58 = vunpack.c.l.bf16 %v2485_v7 }
 0x137   :  { %v2493_v21 = vpack.c.bf16 %v324_v14, %v322_v12  ;;  %v328_v22 = vadd.f32 %v327_v18, %v2480_v61  ;;  %v409_v5 = vadd.f32 %v1824_v2, %v121_v10  ;;  %v400_v6 = vpop.f32.mrb[5].mxu1 }
 0x138   :  { %v401_v12 = vadd.f32 %v400_v6, %v121_v10  ;;  %v1825_v13 = vpop.f32.mrb[6].mxu1 }
 0x139   :  { %v2496_v43 = vpack.c.bf16 %v328_v22, %v326_v17  ;;  %v1715_v14 = vpack.c.bf16 %v409_v5, %v409_v5  ;;  %v412_v15 = vadd.f32 %v1825_v13, %v121_v10  ;;  %v403_v16 = vpop.f32.mrb[7].mxu1 }
 0x13a   :  { %v1711_v18 = vpack.c.bf16 %v401_v12, %v401_v12  ;;  %v404_v19 = vadd.f32 %v403_v16, %v121_v10 }
 0x13b   :  { %v331_v57 = vpop.f32.mrb[8].mxu0  ;;  %532 = vst [vmem:[#allocation3 + $0x50] sm:$0xf] %v1715_v14  ;;  %v1717_v20 = vpack.c.bf16 %v412_v15, %v412_v15 }
 0x13c   :  { %v332_v59 = vadd.f32 %v331_v57, %v2478_v60  ;;  %v333_v62 = vpop.f32.mrb[9].mxu0  ;;  %528 = vst [vmem:[#allocation3 + $0x38] sm:$0xf] %v1711_v18  ;;  %v1713_v23 = vpack.c.bf16 %v404_v19, %v404_v19 }
 0x13d   :  { %v334_v63 = vadd.f32 %v333_v62, %v2480_v61  ;;  %v335_v1 = vpop.f32.mrb[10].mxu0  ;;  %534 = vst [vmem:[#allocation3 + $0x5c] sm:$0xf] %v1717_v20  ;;  %v572_v62 = vunpack.c.h.bf16 %v2485_v7  ;;  %v2519_v7 = vld [vmem:[%s2827_s4] ss:$0 sm:$0xff]  ;;  %s2275_s4 = smov [#allocation10]  }
 0x13e   :  { %v336_v3 = vadd.f32 %v335_v1, %v2478_v60  ;;  %v337_v4 = vpop.f32.mrb[11].mxu0  ;;  %530 = vst [vmem:[#allocation3 + $0x44] sm:$0xf] %v1713_v23  ;;  %v2522_v19 = vld [vmem:[#allocation3 + $0x8] ss:$12 sps:$4 sm:$0xff]   ;;  %s1604_s8 = sshll.u32 %s2275_s4, 4  ;;  %s1605_s8 = int_to_ptr.vmem [resolvable:$true] %s1604_s8 }
 0x13f   :  { %v2501_v8 = vpack.c.bf16 %v334_v63, %v332_v59  ;;  %v338_v11 = vadd.f32 %v337_v4, %v2480_v61  ;;  %s2236_s9 = scalar_lea.vmem %s1605_s8, 512  ;;  %p2241_p11 = scmp.lt.s32.totalorder %s1605_s8, %s1605_s8 }
 0x140   :  { %p2237_p10 = scmp.ne.s32.totalorder %s1605_s8, %s2236_s9  ;;  %p2242_p12 = scmp.lt.s32.totalorder %s2236_s9, %s2236_s9 }
 0x141   :  { %v2504_v17 = vpack.c.bf16 %v338_v11, %v336_v3 }
 0x142   :  { %p2243_p13 = por %p2242_p12, %p2241_p11 }
 0x143   :  { %v341_v22 = vpop.f32.mrb[12].mxu0 }
 0x144   :  { %v342_v25 = vadd.f32 %v341_v22, %v2478_v60  ;;  %v343_v28 = vpop.f32.mrb[13].mxu0  ;;  %v573_v22 = vunpack.c.l.bf16 %v2522_v19  ;;  %p2244_p0 = pnand %p2243_p13, %p2237_p10 }
 0x145   :  { %v344_v31 = vadd.f32 %v343_v28, %v2480_v61  ;;  %v345_v37 = vpop.f32.mrb[14].mxu0 }
 0x146   :  { %v346_v53 = vadd.f32 %v345_v37, %v2478_v60  ;;  %v347_v55 = vpop.f32.mrb[15].mxu0 }
 0x147   :  { %v2509_v56 = vpack.c.bf16 %v344_v31, %v342_v25  ;;  %v348_v10 = vadd.f32 %v347_v55, %v2480_v61 }
 0x149   :  { %v2512_v57 = vpack.c.bf16 %v348_v10, %v346_v53 }
 0x14b   :  { %v737_v59 = vpop.f32.mrb[16].mxu0 }
 0x14c   :  { %v784_v63 = vadd.f32 %v737_v59, %v571_v58  ;;  %v739_v1 = vpop.f32.mrb[17].mxu0  ;;  %v817_v59 = vunpack.c.l.bf16 %v2488_v9 }
 0x14d   :  { %v791_v2 = vadd.f32 %v739_v1, %v572_v62  ;;  %v741_v3 = vpop.f32.mrb[18].mxu0  ;;  %v818_v1 = vunpack.c.h.bf16 %v2488_v9 }
 0x14e   :  { %v1685_v4 = vmul.f32 -1.442695, %v784_v63  ;;  %v742_v5 = vpop.f32.mrb[19].mxu0  ;;  %v778_v6 = vpop.f32.mrb[8].mxu1 }
 0x14f   :  { %v1686_v60 = vmul.f32 -1.442695, %v791_v2  ;;  %v1844_v11 = vpop.f32.mrb[9].mxu1  ;;  %v804_v18 = vadd.f32 %v2519_v7, %v778_v6 }
 0x150   :  { %2066 = vpow2.f32 %v1685_v4  ;;  %v781_v12 = vpop.f32.mrb[10].mxu1 }
 0x151   :  { %2068 = vpow2.f32 %v1686_v60  ;;  %v1845_v61 = vpop.f32.mrb[11].mxu1 }
 0x15a   :  { %v2067_v13 = vpop.eup %2066 }
 0x15b   :  { %v788_v14 = vadd.f32 1.0, %v2067_v13  ;;  %v2069_v15 = vpop.eup %2068 }
 0x15c   :  { %v795_v16 = vadd.f32 1.0, %v2069_v15 }
 0x15d   :  { %2070 = vrcp.f32 %v788_v14 }
 0x15e   :  { %2072 = vrcp.f32 %v795_v16 }
 0x167   :  { %v2071_v20 = vpop.eup %2070 }
 0x168   :  { %v805_v23 = vmul.f32 %v2071_v20, %v804_v18  ;;  %v2073_v28 = vpop.eup %2072 }
 0x169   :  { %v808_v31 = vsub.f32 1.0, %v2073_v28  ;;  %v810_v55 = vmul.f32 0.0, %v2073_v28 }
 0x16a   :  { %v806_v25 = vadd.f32 %v805_v23, %v573_v22  ;;  %v819_v22 = vunpack.c.h.bf16 %v2522_v19  ;;  %v929_v19 = vunpack.c.l.bf16 %v2493_v21 }
 0x16c   :  { %2074 = vtanh.f32 %v806_v25 }
 0x176   :  { %v2075_v37 = vpop.eup %2074 }
 0x177   :  { %v809_v53 = vmul.f32 %v2075_v37, %v808_v31 }
 0x179   :  { %v2525_v10 = vadd.f32 %v810_v55, %v809_v53 }
 0x17b   :  { %v812_v58 = vpack.c.bf16 %v2525_v10, %v2525_v10 }
 0x17d   :  { %813 = vst [vmem:[#allocation10] sm:$0xf] %v812_v58  ;;  %853 = vmatmul.mubr.bf16.vlgmr.msra.gmra.mrb[20].mxu0 %v812_v58  ;;  %1863 = vmatmul.mubr.bf16.vlgmr.msra.gmra.mrb[12].mxu1 %v812_v58 }
 0x17e   :  { %933 = vmatpush1.bf16.msra.mxu0 %v2354_v26  ;;  %1867 = vmatpush3.bf16.msra.mxu1 %v2373_v35 }
 0x17f   :  { %934 = vmatprep.subr.bf16.mxu0 %v2357_v27  ;;  %1868 = vmatprep.subr.bf16.mxu1 %v2272_v34 }
 0x180   :  { %964 = vmatprep.mubr.bf16.mxu0 %v2271_v0  ;;  %1882 = vmatprep.mubr.msk.bf16.mxu1 %vm2273_vm0, %v2272_v34 }
 0x182   :  { %935 = vmatpush1.bf16.msra.mxu0 %v2360_v29  ;;  %1869 = vmatpush3.bf16.msra.mxu1 %v2383_v39 }
 0x183   :  { %936 = vmatprep.subr.bf16.mxu0 %v2364_v30  ;;  %1870 = vmatprep.subr.bf16.mxu1 %v2272_v34 }
 0x186   :  { %937 = vmatpush1.bf16.msra.mxu0 %v2367_v32  ;;  %1871 = vmatpush3.bf16.msra.mxu1 %v2393_v42 }
 0x187   :  { %938 = vmatprep.subr.bf16.mxu0 %v2370_v33  ;;  %1872 = vmatprep.subr.bf16.mxu1 %v2272_v34 }
 0x18a   :  { %939 = vmatpush1.bf16.msra.mxu0 %v2376_v36  ;;  %1873 = vmatpush3.bf16.msra.mxu1 %v2404_v46 }
 0x18b   :  { %940 = vmatprep.subr.bf16.mxu0 %v2380_v38  ;;  %1874 = vmatprep.subr.bf16.mxu1 %v2272_v34 }
 0x18e   :  { %941 = vmatpush1.bf16.msra.mxu0 %v2387_v40  ;;  %1875 = vmatpush3.bf16.msra.mxu1 %v2416_v49 }
 0x18f   :  { %942 = vmatprep.subr.bf16.mxu0 %v2390_v41  ;;  %1876 = vmatprep.subr.bf16.mxu1 %v2272_v34 }
 0x192   :  { %943 = vmatpush1.bf16.msra.mxu0 %v2397_v44  ;;  %1877 = vmatpush3.bf16.msra.mxu1 %v2425_v51 }
 0x193   :  { %944 = vmatprep.subr.bf16.mxu0 %v2401_v45  ;;  %1878 = vmatprep.subr.bf16.mxu1 %v2272_v34 }
 0x196   :  { %945 = vmatpush1.bf16.msra.mxu0 %v2410_v47  ;;  %1879 = vmatpush3.bf16.msra.mxu1 %v2431_v52 }
 0x197   :  { %946 = vmatprep.subr.bf16.mxu0 %v2413_v48  ;;  %1880 = vmatprep.subr.bf16.mxu1 %v2272_v34 }
 0x19a   :  { %947 = vmatpush1.bf16.msra.mxu0 %v2420_v50  ;;  %1881 = vmatpush3.bf16.msra.mxu1 %v2438_v54 }
 0x19b   :  { %1044 = vmatprep.subr.bf16.mxu0 %v2352_v24  ;;  %1886 = vmatprep.subr.bf16.mxu1 %v2272_v34 }
 0x250   :  { %v854_v62 = vpop.f32.mrb[20].mxu0  ;;  %v895_v63 = vpop.f32.mrb[12].mxu1 }
 0x251   :  { %v901_v2 = vadd.f32 %v854_v62, %v817_v59  ;;  %v856_v3 = vpop.f32.mrb[21].mxu0  ;;  %v1864_v4 = vpop.f32.mrb[13].mxu1  ;;  %v915_v20 = vadd.f32 %v2519_v7, %v895_v63  ;;  %v930_v63 = vunpack.c.h.bf16 %v2493_v21 }
 0x252   :  { %v908_v5 = vadd.f32 %v856_v3, %v818_v1  ;;  %v858_v60 = vpop.f32.mrb[22].mxu0  ;;  %v898_v6 = vpop.f32.mrb[14].mxu1 }
 0x253   :  { %v1688_v11 = vmul.f32 -1.442695, %v901_v2  ;;  %v859_v12 = vpop.f32.mrb[23].mxu0  ;;  %v1865_v61 = vpop.f32.mrb[15].mxu1 }
 0x254   :  { %v1689_v13 = vmul.f32 -1.442695, %v908_v5 }
 0x255   :  { %2076 = vpow2.f32 %v1688_v11 }
 0x256   :  { %2078 = vpow2.f32 %v1689_v13 }
 0x25f   :  { %v2077_v14 = vpop.eup %2076 }
 0x260   :  { %v905_v15 = vadd.f32 1.0, %v2077_v14  ;;  %v2079_v16 = vpop.eup %2078 }
 0x261   :  { %v912_v18 = vadd.f32 1.0, %v2079_v16 }
 0x262   :  { %2080 = vrcp.f32 %v905_v15 }
 0x263   :  { %2082 = vrcp.f32 %v912_v18  ;;  %v2610_v18 = vld [vmem:[#allocation3 + $0x20] ss:$12 sps:$4 sm:$0xff]  }
 0x26c   :  { %v2081_v9 = vpop.eup %2080 }
 0x26d   :  { %v916_v23 = vmul.f32 %v2081_v9, %v915_v20  ;;  %v2083_v28 = vpop.eup %2082  ;;  %v931_v9 = vunpack.c.l.bf16 %v2610_v18 }
 0x26e   :  { %v919_v31 = vsub.f32 1.0, %v2083_v28  ;;  %v921_v55 = vmul.f32 %v2083_v28, %v2525_v10 }
 0x26f   :  { %v917_v25 = vadd.f32 %v916_v23, %v819_v22 }
 0x271   :  { %2084 = vtanh.f32 %v917_v25 }
 0x27b   :  { %v2085_v37 = vpop.eup %2084 }
 0x27c   :  { %v920_v53 = vmul.f32 %v2085_v37, %v919_v31 }
 0x27e   :  { %v2569_v58 = vadd.f32 %v921_v55, %v920_v53 }
 0x280   :  { %v923_v59 = vpack.c.bf16 %v2569_v58, %v2569_v58 }
 0x282   :  { %925 = vst [vmem:[#allocation10 + $0x4] sm:$0xf] %v923_v59  ;;  %965 = vmatmul.mubr.bf16.vlgmr.msra.gmra.mrb[24].mxu0 %v923_v59  ;;  %1883 = vmatmul.mubr.bf16.vlgmr.msra.gmra.mrb[16].mxu1 %v923_v59 }
 0x283   :  { %1045 = vmatpush1.bf16.msra.mxu0 %v2354_v26  ;;  %1887 = vmatpush3.bf16.msra.mxu1 %v2373_v35 }
 0x284   :  { %1046 = vmatprep.subr.bf16.mxu0 %v2357_v27  ;;  %1888 = vmatprep.subr.bf16.mxu1 %v2272_v34 }
 0x285   :  { %1076 = vmatprep.mubr.bf16.mxu0 %v2271_v0  ;;  %1902 = vmatprep.mubr.msk.bf16.mxu1 %vm2273_vm0, %v2272_v34 }
 0x287   :  { %1047 = vmatpush1.bf16.msra.mxu0 %v2360_v29  ;;  %1889 = vmatpush3.bf16.msra.mxu1 %v2383_v39 }
 0x288   :  { %1048 = vmatprep.subr.bf16.mxu0 %v2364_v30  ;;  %1890 = vmatprep.subr.bf16.mxu1 %v2272_v34 }
 0x28b   :  { %1049 = vmatpush1.bf16.msra.mxu0 %v2367_v32  ;;  %1891 = vmatpush3.bf16.msra.mxu1 %v2393_v42 }
 0x28c   :  { %1050 = vmatprep.subr.bf16.mxu0 %v2370_v33  ;;  %1892 = vmatprep.subr.bf16.mxu1 %v2272_v34 }
 0x28f   :  { %1051 = vmatpush1.bf16.msra.mxu0 %v2376_v36  ;;  %1893 = vmatpush3.bf16.msra.mxu1 %v2404_v46 }
 0x290   :  { %1052 = vmatprep.subr.bf16.mxu0 %v2380_v38  ;;  %1894 = vmatprep.subr.bf16.mxu1 %v2272_v34 }
 0x293   :  { %1053 = vmatpush1.bf16.msra.mxu0 %v2387_v40  ;;  %1895 = vmatpush3.bf16.msra.mxu1 %v2416_v49 }
 0x294   :  { %1054 = vmatprep.subr.bf16.mxu0 %v2390_v41  ;;  %1896 = vmatprep.subr.bf16.mxu1 %v2272_v34 }
 0x297   :  { %1055 = vmatpush1.bf16.msra.mxu0 %v2397_v44  ;;  %1897 = vmatpush3.bf16.msra.mxu1 %v2425_v51 }
 0x298   :  { %1056 = vmatprep.subr.bf16.mxu0 %v2401_v45  ;;  %1898 = vmatprep.subr.bf16.mxu1 %v2272_v34 }
 0x29b   :  { %1057 = vmatpush1.bf16.msra.mxu0 %v2410_v47  ;;  %1899 = vmatpush3.bf16.msra.mxu1 %v2431_v52 }
 0x29c   :  { %1058 = vmatprep.subr.bf16.mxu0 %v2413_v48  ;;  %1900 = vmatprep.subr.bf16.mxu1 %v2272_v34 }
 0x29f   :  { %1059 = vmatpush1.bf16.msra.mxu0 %v2420_v50  ;;  %1901 = vmatpush3.bf16.msra.mxu1 %v2438_v54 }
 0x2a0   :  { %1156 = vmatprep.subr.bf16.mxu0 %v2352_v24  ;;  %1906 = vmatprep.subr.bf16.mxu1 %v2272_v34 }
 0x355   :  { %v966_v10 = vpop.f32.mrb[24].mxu0  ;;  %v1007_v62 = vpop.f32.mrb[16].mxu1 }
 0x356   :  { %v1013_v1 = vadd.f32 %v966_v10, %v929_v19  ;;  %v968_v2 = vpop.f32.mrb[25].mxu0  ;;  %v1884_v3 = vpop.f32.mrb[17].mxu1  ;;  %v1027_v21 = vadd.f32 %v2519_v7, %v1007_v62  ;;  %v1042_v62 = vunpack.c.h.bf16 %v2496_v43 }
 0x357   :  { %v1020_v4 = vadd.f32 %v968_v2, %v930_v63  ;;  %v970_v5 = vpop.f32.mrb[26].mxu0  ;;  %v1010_v60 = vpop.f32.mrb[18].mxu1 }
 0x358   :  { %v1690_v6 = vmul.f32 -1.442695, %v1013_v1  ;;  %v971_v11 = vpop.f32.mrb[27].mxu0  ;;  %v1885_v12 = vpop.f32.mrb[19].mxu1 }
 0x359   :  { %v1691_v61 = vmul.f32 -1.442695, %v1020_v4 }
 0x35a   :  { %2086 = vpow2.f32 %v1690_v6 }
 0x35b   :  { %2088 = vpow2.f32 %v1691_v61 }
 0x364   :  { %v2087_v13 = vpop.eup %2086 }
 0x365   :  { %v1017_v14 = vadd.f32 1.0, %v2087_v13  ;;  %v2089_v15 = vpop.eup %2088 }
 0x366   :  { %v1024_v16 = vadd.f32 1.0, %v2089_v15 }
 0x367   :  { %2090 = vrcp.f32 %v1017_v14 }
 0x368   :  { %2092 = vrcp.f32 %v1024_v16  ;;  %v1043_v16 = vunpack.c.h.bf16 %v2610_v18 }
 0x371   :  { %v2091_v20 = vpop.eup %2090 }
 0x372   :  { %v1028_v22 = vmul.f32 %v2091_v20, %v1027_v21  ;;  %v2093_v25 = vpop.eup %2092 }
 0x373   :  { %v1031_v28 = vsub.f32 1.0, %v2093_v25  ;;  %v1033_v53 = vmul.f32 %v2093_v25, %v2569_v58  ;;  %v1041_v58 = vunpack.c.l.bf16 %v2496_v43 }
 0x374   :  { %v1029_v23 = vadd.f32 %v1028_v22, %v931_v9 }
 0x376   :  { %2094 = vtanh.f32 %v1029_v23 }
 0x380   :  { %v2095_v31 = vpop.eup %2094 }
 0x381   :  { %v1032_v37 = vmul.f32 %v2095_v31, %v1031_v28 }
 0x383   :  { %v2615_v55 = vadd.f32 %v1033_v53, %v1032_v37 }
 0x385   :  { %v1035_v59 = vpack.c.bf16 %v2615_v55, %v2615_v55 }
 0x387   :  { %1037 = vst [vmem:[#allocation10 + $0x8] sm:$0xf] %v1035_v59  ;;  %1077 = vmatmul.mubr.bf16.vlgmr.msra.gmra.mrb[28].mxu0 %v1035_v59  ;;  %1903 = vmatmul.mubr.bf16.vlgmr.msra.gmra.mrb[20].mxu1 %v1035_v59 }
 0x388   :  { %1157 = vmatpush1.bf16.msra.mxu0 %v2354_v26  ;;  %1907 = vmatpush3.bf16.msra.mxu1 %v2373_v35 }
 0x389   :  { %1158 = vmatprep.subr.bf16.mxu0 %v2357_v27  ;;  %1908 = vmatprep.subr.bf16.mxu1 %v2272_v34 }
 0x38a   :  { %1188 = vmatprep.mubr.bf16.mxu0 %v2271_v0  ;;  %1922 = vmatprep.mubr.msk.bf16.mxu1 %vm2273_vm0, %v2272_v34 }
 0x38c   :  { %1159 = vmatpush1.bf16.msra.mxu0 %v2360_v29  ;;  %1909 = vmatpush3.bf16.msra.mxu1 %v2383_v39 }
 0x38d   :  { %1160 = vmatprep.subr.bf16.mxu0 %v2364_v30  ;;  %1910 = vmatprep.subr.bf16.mxu1 %v2272_v34 }
 0x390   :  { %1161 = vmatpush1.bf16.msra.mxu0 %v2367_v32  ;;  %1911 = vmatpush3.bf16.msra.mxu1 %v2393_v42 }
 0x391   :  { %1162 = vmatprep.subr.bf16.mxu0 %v2370_v33  ;;  %1912 = vmatprep.subr.bf16.mxu1 %v2272_v34 }
 0x394   :  { %1163 = vmatpush1.bf16.msra.mxu0 %v2376_v36  ;;  %1913 = vmatpush3.bf16.msra.mxu1 %v2404_v46 }
 0x395   :  { %1164 = vmatprep.subr.bf16.mxu0 %v2380_v38  ;;  %1914 = vmatprep.subr.bf16.mxu1 %v2272_v34 }
 0x398   :  { %1165 = vmatpush1.bf16.msra.mxu0 %v2387_v40  ;;  %1915 = vmatpush3.bf16.msra.mxu1 %v2416_v49 }
 0x399   :  { %1166 = vmatprep.subr.bf16.mxu0 %v2390_v41  ;;  %1916 = vmatprep.subr.bf16.mxu1 %v2272_v34 }
 0x39c   :  { %1167 = vmatpush1.bf16.msra.mxu0 %v2397_v44  ;;  %1917 = vmatpush3.bf16.msra.mxu1 %v2425_v51 }
 0x39d   :  { %1168 = vmatprep.subr.bf16.mxu0 %v2401_v45  ;;  %1918 = vmatprep.subr.bf16.mxu1 %v2272_v34 }
 0x3a0   :  { %1169 = vmatpush1.bf16.msra.mxu0 %v2410_v47  ;;  %1919 = vmatpush3.bf16.msra.mxu1 %v2431_v52 }
 0x3a1   :  { %1170 = vmatprep.subr.bf16.mxu0 %v2413_v48  ;;  %1920 = vmatprep.subr.bf16.mxu1 %v2272_v34 }
 0x3a4   :  { %1171 = vmatpush1.bf16.msra.mxu0 %v2420_v50  ;;  %1921 = vmatpush3.bf16.msra.mxu1 %v2438_v54 }
 0x3a5   :  { %1268 = vmatprep.subr.bf16.mxu0 %v2352_v24  ;;  %1926 = vmatprep.subr.bf16.mxu1 %v2272_v34 }
 0x45a   :  { %v1078_v19 = vpop.f32.mrb[28].mxu0  ;;  %v1119_v10 = vpop.f32.mrb[20].mxu1 }
 0x45b   :  { %v1125_v63 = vadd.f32 %v1078_v19, %v1041_v58  ;;  %v1080_v1 = vpop.f32.mrb[29].mxu0  ;;  %v1904_v2 = vpop.f32.mrb[21].mxu1  ;;  %v1139_v15 = vadd.f32 %v2519_v7, %v1119_v10 }
 0x45c   :  { %v1132_v3 = vadd.f32 %v1080_v1, %v1042_v62  ;;  %v1082_v4 = vpop.f32.mrb[30].mxu0  ;;  %v1122_v5 = vpop.f32.mrb[22].mxu1  ;;  %v2702_v62 = vld [vmem:[#allocation3 + $0x38] ss:$12 sps:$4 sm:$0xff]  }
 0x45d   :  { %v1692_v60 = vmul.f32 -1.442695, %v1125_v63  ;;  %v1083_v6 = vpop.f32.mrb[31].mxu0  ;;  %v1905_v11 = vpop.f32.mrb[23].mxu1  ;;  %v1155_v1 = vunpack.c.l.bf16 %v2702_v62 }
 0x45e   :  { %v1693_v12 = vmul.f32 -1.442695, %v1132_v3 }
 0x45f   :  { %2096 = vpow2.f32 %v1692_v60 }
 0x460   :  { %2098 = vpow2.f32 %v1693_v12 }
 0x469   :  { %v2097_v24 = vpop.eup %2096 }
 0x46a   :  { %v1129_v61 = vadd.f32 1.0, %v2097_v24  ;;  %v2099_v13 = vpop.eup %2098 }
 0x46b   :  { %v1136_v14 = vadd.f32 1.0, %v2099_v13  ;;  %v2714_v13 = vld [vmem:[#allocation9 + $0x8] ss:$12 sps:$4 sm:$0xff]  }
 0x46c   :  { %2100 = vrcp.f32 %v1129_v61  ;;  %v2711_v61 = vld [vmem:[#allocation9] ss:$12 sps:$4 sm:$0xff]  }
 0x46d   :  { %2102 = vrcp.f32 %v1136_v14  ;;  %v2717_v14 = vld [vmem:[#allocation9 + $0x1c] ss:$12 sps:$4 sm:$0xff]  }
 0x476   :  { %v2101_v43 = vpop.eup %2100 }
 0x477   :  { %v1140_v21 = vmul.f32 %v2101_v43, %v1139_v15  ;;  %v2103_v9 = vpop.eup %2102  ;;  %v2724_v15 = vld [vmem:[#allocation9 + $0x18] ss:$12 sps:$4 sm:$0xff]   ;;  %v2728_v43 = vld [vmem:[#allocation9 + $0x34] ss:$12 sps:$4 sm:$0xff]  }
 0x478   :  { %v1143_v22 = vsub.f32 1.0, %v2103_v9  ;;  %v1145_v28 = vmul.f32 %v2103_v9, %v2615_v55  ;;  %v2748_v9 = vld [vmem:[#allocation9 + $0x60] ss:$12 sps:$4 sm:$0xff]  }
 0x479   :  { %v1141_v20 = vadd.f32 %v1140_v21, %v1043_v16  ;;  %v2732_v16 = vld [vmem:[#allocation9 + $0x30] ss:$12 sps:$4 sm:$0xff]   ;;  %v2736_v21 = vld [vmem:[#allocation9 + $0x4c] ss:$12 sps:$4 sm:$0xff]  }
 0x47b   :  { %2104 = vtanh.f32 %v1141_v20  ;;  %v2740_v20 = vld [vmem:[#allocation9 + $0x48] ss:$12 sps:$4 sm:$0xff]  }
 0x485   :  { %v2105_v23 = vpop.eup %2104 }
 0x486   :  { %v1144_v25 = vmul.f32 %v2105_v23, %v1143_v22  ;;  %v2756_v22 = vld [vmem:[#allocation9 + $0x78] ss:$12 sps:$4 sm:$0xff]  }
 0x488   :  { %v2659_v31 = vadd.f32 %v1145_v28, %v1144_v25 }
 0x48a   :  { %v1147_v37 = vpack.c.bf16 %v2659_v31, %v2659_v31 }
 0x48c   :  { %1149 = vst [vmem:[#allocation10 + $0xc] sm:$0xf] %v1147_v37  ;;  %1189 = vmatmul.mubr.bf16.vlgmr.msra.gmra.mrb[32].mxu0 %v1147_v37  ;;  %1923 = vmatmul.mubr.bf16.vlgmr.msra.gmra.mrb[24].mxu1 %v1147_v37 }
 0x48d   :  { %1269 = vmatpush1.bf16.msra.mxu0 %v2354_v26  ;;  %1927 = vmatpush3.bf16.msra.mxu1 %v2373_v35  ;;  %v2696_v26 = vld [vmem:[#allocation9 + $0x4] ss:$12 sps:$4 sm:$0xff]  }
 0x48e   :  { %1270 = vmatprep.subr.bf16.mxu0 %v2357_v27  ;;  %1928 = vmatprep.subr.bf16.mxu1 %v2272_v34  ;;  %v1153_v27 = vunpack.c.l.bf16 %v2501_v8 }
 0x48f   :  { %1300 = vmatprep.mubr.bf16.mxu0 %v2271_v0  ;;  %1942 = vmatprep.mubr.msk.bf16.mxu1 %vm2273_vm0, %v2272_v34 }
 0x491   :  { %1271 = vmatpush1.bf16.msra.mxu0 %v2360_v29  ;;  %1929 = vmatpush3.bf16.msra.mxu1 %v2383_v39 }
 0x492   :  { %1272 = vmatprep.subr.bf16.mxu0 %v2364_v30  ;;  %1930 = vmatprep.subr.bf16.mxu1 %v2272_v34 }
 0x495   :  { %1273 = vmatpush1.bf16.msra.mxu0 %v2367_v32  ;;  %1931 = vmatpush3.bf16.msra.mxu1 %v2393_v42  ;;  %v1154_v32 = vunpack.c.h.bf16 %v2501_v8 }
 0x496   :  { %1274 = vmatprep.subr.bf16.mxu0 %v2370_v33  ;;  %1932 = vmatprep.subr.bf16.mxu1 %v2272_v34 }
 0x499   :  { %1275 = vmatpush1.bf16.msra.mxu0 %v2376_v36  ;;  %1933 = vmatpush3.bf16.msra.mxu1 %v2404_v46 }
 0x49a   :  { %1276 = vmatprep.subr.bf16.mxu0 %v2380_v38  ;;  %1934 = vmatprep.subr.bf16.mxu1 %v2272_v34 }
 0x49d   :  { %1277 = vmatpush1.bf16.msra.mxu0 %v2387_v40  ;;  %1935 = vmatpush3.bf16.msra.mxu1 %v2416_v49 }
 0x49e   :  { %1278 = vmatprep.subr.bf16.mxu0 %v2390_v41  ;;  %1936 = vmatprep.subr.bf16.mxu1 %v2272_v34 }
 0x4a1   :  { %1279 = vmatpush1.bf16.msra.mxu0 %v2397_v44  ;;  %1937 = vmatpush3.bf16.msra.mxu1 %v2425_v51 }
 0x4a2   :  { %1280 = vmatprep.subr.bf16.mxu0 %v2401_v45  ;;  %1938 = vmatprep.subr.bf16.mxu1 %v2272_v34 }
 0x4a5   :  { %1281 = vmatpush1.bf16.msra.mxu0 %v2410_v47  ;;  %1939 = vmatpush3.bf16.msra.mxu1 %v2431_v52 }
 0x4a6   :  { %1282 = vmatprep.subr.bf16.mxu0 %v2413_v48  ;;  %1940 = vmatprep.subr.bf16.mxu1 %v2272_v34 }
 0x4a9   :  { %1283 = vmatpush1.bf16.msra.mxu0 %v2420_v50  ;;  %1941 = vmatpush3.bf16.msra.mxu1 %v2438_v54 }
 0x4aa   :  { %1380 = vmatprep.subr.bf16.mxu0 %v2696_v26  ;;  %1946 = vmatprep.subr.bf16.mxu1 %v2272_v34 }
 0x55f   :  { %v1190_v29 = vpop.f32.mrb[32].mxu0  ;;  %v1231_v30 = vpop.f32.mrb[24].mxu1 }
 0x560   :  { %v1237_v33 = vadd.f32 %v1190_v29, %v1153_v27  ;;  %v1192_v35 = vpop.f32.mrb[33].mxu0  ;;  %v1924_v36 = vpop.f32.mrb[25].mxu1  ;;  %v1251_v8 = vadd.f32 %v2519_v7, %v1231_v30 }
 0x561   :  { %v1244_v38 = vadd.f32 %v1192_v35, %v1154_v32  ;;  %v1194_v40 = vpop.f32.mrb[34].mxu0  ;;  %v1234_v41 = vpop.f32.mrb[26].mxu1 }
 0x562   :  { %v1694_v44 = vmul.f32 -1.442695, %v1237_v33  ;;  %v1195_v18 = vpop.f32.mrb[35].mxu0  ;;  %v1925_v53 = vpop.f32.mrb[27].mxu1  ;;  %v1267_v33 = vunpack.c.h.bf16 %v2702_v62  ;;  %v2164_v62 = vld [vmem:[#allocation9 + $0x94] ss:$12 sps:$4 sm:$0xff]  }
 0x563   :  { %v1695_v55 = vmul.f32 -1.442695, %v1244_v38 }
 0x564   :  { %2106 = vpow2.f32 %v1694_v44 }
 0x565   :  { %2108 = vpow2.f32 %v1695_v55 }
 0x56e   :  { %v2107_v59 = vpop.eup %2106 }
 0x56f   :  { %v1241_v58 = vadd.f32 1.0, %v2107_v59  ;;  %v2109_v19 = vpop.eup %2108  ;;  %v2159_v59 = vld [vmem:[#allocation9 + $0x20] ss:$12 sps:$4 sm:$0xff]  }
 0x570   :  { %v1248_v10 = vadd.f32 1.0, %v2109_v19  ;;  %v2162_v19 = vld [vmem:[#allocation9 + $0x68] ss:$12 sps:$4 sm:$0xff]  }
 0x571   :  { %2110 = vrcp.f32 %v1241_v58  ;;  %v2160_v58 = vld [vmem:[#allocation9 + $0x38] ss:$12 sps:$4 sm:$0xff]  }
 0x572   :  { %2112 = vrcp.f32 %v1248_v10  ;;  %v2163_v10 = vld [vmem:[#allocation9 + $0x80] ss:$12 sps:$4 sm:$0xff]  }
 0x57b   :  { %v2111_v63 = vpop.eup %2110 }
 0x57c   :  { %v1252_v2 = vmul.f32 %v2111_v63, %v1251_v8  ;;  %v2113_v4 = vpop.eup %2112  ;;  %v2165_v8 = vld [vmem:[#allocation9 + $0x90] ss:$12 sps:$4 sm:$0xff]   ;;  %v2166_v63 = vld [vmem:[#allocation9 + $0x98] ss:$12 sps:$4 sm:$0xff]  }
 0x57d   :  { %v1255_v5 = vsub.f32 1.0, %v2113_v4  ;;  %v1257_v11 = vmul.f32 %v2113_v4, %v2659_v31  ;;  %v1377_v4 = vunpack.c.l.bf16 %v2509_v56 }
 0x57e   :  { %v1253_v3 = vadd.f32 %v1252_v2, %v1155_v1  ;;  %v2167_v1 = vld [vmem:[#allocation9 + $0xac] ss:$12 sps:$4 sm:$0xff]   ;;  %v2168_v2 = vld [vmem:[#allocation9 + $0xa8] ss:$12 sps:$4 sm:$0xff]  }
 0x580   :  { %2114 = vtanh.f32 %v1253_v3  ;;  %v2169_v3 = vld [vmem:[#allocation9 + $0xb0] ss:$12 sps:$4 sm:$0xff]  }
 0x58a   :  { %v2115_v60 = vpop.eup %2114 }
 0x58b   :  { %v1256_v6 = vmul.f32 %v2115_v60, %v1255_v5 }
 0x58d   :  { %v2707_v12 = vadd.f32 %v1257_v11, %v1256_v6  ;;  %v1378_v6 = vunpack.c.h.bf16 %v2509_v56 }
 0x58f   :  { %v1259_v24 = vpack.c.bf16 %v2707_v12, %v2707_v12 }
 0x591   :  { %1261 = vst [vmem:[#allocation10 + $0x10] sm:$0xf] %v1259_v24  ;;  %1301 = vmatmul.mubr.bf16.vlgmr.msra.gmra.mrb[36].mxu0 %v1259_v24  ;;  %1943 = vmatmul.mubr.bf16.vlgmr.msra.gmra.mrb[28].mxu1 %v1259_v24 }
 0x592   :  { %1381 = vmatpush1.bf16.msra.mxu0 %v2711_v61  ;;  %1947 = vmatpush3.bf16.msra.mxu1 %v2714_v13 }
 0x593   :  { %1382 = vmatprep.subr.bf16.mxu0 %v2717_v14  ;;  %1948 = vmatprep.subr.bf16.mxu1 %v2272_v34 }
 0x594   :  { %1412 = vmatprep.mubr.bf16.mxu0 %v2271_v0  ;;  %1962 = vmatprep.mubr.msk.bf16.mxu1 %vm2273_vm0, %v2272_v34 }
 0x596   :  { %1383 = vmatpush1.bf16.msra.mxu0 %v2724_v15  ;;  %1949 = vmatpush3.bf16.msra.mxu1 %v2383_v39  ;;  %v2744_v39 = vld [vmem:[#allocation9 + $0x64] ss:$12 sps:$4 sm:$0xff]  }
 0x597   :  { %1384 = vmatprep.subr.bf16.mxu0 %v2728_v43  ;;  %1950 = vmatprep.subr.bf16.mxu1 %v2272_v34 }
 0x59a   :  { %1385 = vmatpush1.bf16.msra.mxu0 %v2732_v16  ;;  %1951 = vmatpush3.bf16.msra.mxu1 %v2393_v42  ;;  %v2752_v42 = vld [vmem:[#allocation9 + $0x7c] ss:$12 sps:$4 sm:$0xff]  }
 0x59b   :  { %1386 = vmatprep.subr.bf16.mxu0 %v2736_v21  ;;  %1952 = vmatprep.subr.bf16.mxu1 %v2272_v34 }
 0x59e   :  { %1387 = vmatpush1.bf16.msra.mxu0 %v2740_v20  ;;  %1953 = vmatpush3.bf16.msra.mxu1 %v2404_v46 }
 0x59f   :  { %1388 = vmatprep.subr.bf16.mxu0 %v2744_v39  ;;  %1954 = vmatprep.subr.bf16.mxu1 %v2272_v34 }
 0x5a2   :  { %1389 = vmatpush1.bf16.msra.mxu0 %v2748_v9  ;;  %1955 = vmatpush3.bf16.msra.mxu1 %v2416_v49 }
 0x5a3   :  { %1390 = vmatprep.subr.bf16.mxu0 %v2752_v42  ;;  %1956 = vmatprep.subr.bf16.mxu1 %v2272_v34 }
 0x5a6   :  { %1391 = vmatpush1.bf16.msra.mxu0 %v2756_v22  ;;  %1957 = vmatpush3.bf16.msra.mxu1 %v2425_v51 }
 0x5a7   :  { %1392 = vmatprep.subr.bf16.mxu0 %v2401_v45  ;;  %1958 = vmatprep.subr.bf16.mxu1 %v2272_v34  ;;  %v1265_v45 = vunpack.c.l.bf16 %v2504_v17 }
 0x5aa   :  { %1393 = vmatpush1.bf16.msra.mxu0 %v2410_v47  ;;  %1959 = vmatpush3.bf16.msra.mxu1 %v2431_v52  ;;  %v1266_v47 = vunpack.c.h.bf16 %v2504_v17 }
 0x5ab   :  { %1394 = vmatprep.subr.bf16.mxu0 %v2413_v48  ;;  %1960 = vmatprep.subr.bf16.mxu1 %v2272_v34 }
 0x5ae   :  { %1395 = vmatpush1.bf16.msra.mxu0 %v2420_v50  ;;  %1961 = vmatpush3.bf16.msra.mxu1 %v2438_v54 }
 0x5af   :  { %1492 = vmatprep.subr.bf16.mxu0 %v2696_v26  ;;  %1966 = vmatprep.subr.bf16.mxu1 %v2272_v34 }
 0x664   :  { %v1302_v46 = vpop.f32.mrb[36].mxu0  ;;  %v1343_v49 = vpop.f32.mrb[28].mxu1 }
 0x665   :  { %v1349_v51 = vadd.f32 %v1302_v46, %v1265_v45  ;;  %v1304_v52 = vpop.f32.mrb[37].mxu0  ;;  %v1944_v23 = vpop.f32.mrb[29].mxu1  ;;  %v1363_v32 = vadd.f32 %v2519_v7, %v1343_v49 }
 0x666   :  { %v1356_v48 = vadd.f32 %v1304_v52, %v1266_v47  ;;  %v1306_v25 = vpop.f32.mrb[38].mxu0  ;;  %v1346_v28 = vpop.f32.mrb[30].mxu1 }
 0x667   :  { %v1696_v31 = vmul.f32 -1.442695, %v1349_v51  ;;  %v1307_v50 = vpop.f32.mrb[39].mxu0  ;;  %v1945_v37 = vpop.f32.mrb[31].mxu1 }
 0x668   :  { %v1697_v54 = vmul.f32 -1.442695, %v1356_v48 }
 0x669   :  { %2116 = vpow2.f32 %v1696_v31  ;;  %v1489_v31 = vunpack.c.l.bf16 %v2512_v57 }
 0x66a   :  { %2118 = vpow2.f32 %v1697_v54  ;;  %v1490_v54 = vunpack.c.h.bf16 %v2512_v57 }
 0x673   :  { %v2117_v26 = vpop.eup %2116 }
 0x674   :  { %v1353_v27 = vadd.f32 1.0, %v2117_v26  ;;  %v2119_v29 = vpop.eup %2118 }
 0x675   :  { %v1360_v30 = vadd.f32 1.0, %v2119_v29 }
 0x676   :  { %2120 = vrcp.f32 %v1353_v27 }
 0x677   :  { %2122 = vrcp.f32 %v1360_v30 }
 0x680   :  { %v2121_v17 = vpop.eup %2120 }
 0x681   :  { %v1364_v35 = vmul.f32 %v2121_v17, %v1363_v32  ;;  %v2123_v38 = vpop.eup %2122 }
 0x682   :  { %v1367_v40 = vsub.f32 1.0, %v2123_v38  ;;  %v1369_v18 = vmul.f32 %v2123_v38, %v2707_v12 }
 0x683   :  { %v1365_v36 = vadd.f32 %v1364_v35, %v1267_v33 }
 0x685   :  { %2124 = vtanh.f32 %v1365_v36 }
 0x68f   :  { %v2125_v41 = vpop.eup %2124 }
 0x690   :  { %v1368_v44 = vmul.f32 %v2125_v41, %v1367_v40 }
 0x692   :  { %v2775_v53 = vadd.f32 %v1369_v18, %v1368_v44 }
 0x694   :  { %v1371_v55 = vpack.c.bf16 %v2775_v53, %v2775_v53 }
 0x696   :  { %1373 = vst [vmem:[#allocation10 + $0x14] sm:$0xf] %v1371_v55  ;;  %1413 = vmatmul.mubr.bf16.vlgmr.msra.gmra.mrb[40].mxu0 %v1371_v55  ;;  %1963 = vmatmul.mubr.bf16.vlgmr.msra.gmra.mrb[32].mxu1 %v1371_v55 }
 0x697   :  { %1493 = vmatpush1.bf16.msra.mxu0 %v2711_v61  ;;  %1967 = vmatpush3.bf16.msra.mxu1 %v2714_v13 }
 0x698   :  { %1494 = vmatprep.subr.bf16.mxu0 %v2717_v14  ;;  %1968 = vmatprep.subr.bf16.mxu1 %v2272_v34 }
 0x699   :  { %1524 = vmatprep.mubr.bf16.mxu0 %v2271_v0  ;;  %1982 = vmatprep.mubr.msk.bf16.mxu1 %vm2273_vm0, %v2272_v34  ;;  %v2161_v0 = vld [vmem:[#allocation9 + $0x50] ss:$12 sps:$4 sm:$0xff]  }
 0x69b   :  { %1495 = vmatpush1.bf16.msra.mxu0 %v2724_v15  ;;  %1969 = vmatpush3.bf16.msra.mxu1 %v2159_v59 }
 0x69c   :  { %1496 = vmatprep.subr.bf16.mxu0 %v2728_v43  ;;  %1970 = vmatprep.subr.bf16.mxu1 %v2272_v34 }
 0x69f   :  { %1497 = vmatpush1.bf16.msra.mxu0 %v2732_v16  ;;  %1971 = vmatpush3.bf16.msra.mxu1 %v2160_v58 }
 0x6a0   :  { %1498 = vmatprep.subr.bf16.mxu0 %v2736_v21  ;;  %1972 = vmatprep.subr.bf16.mxu1 %v2272_v34 }
 0x6a3   :  { %1499 = vmatpush1.bf16.msra.mxu0 %v2740_v20  ;;  %1973 = vmatpush3.bf16.msra.mxu1 %v2161_v0 }
 0x6a4   :  { %1500 = vmatprep.subr.bf16.mxu0 %v2744_v39  ;;  %1974 = vmatprep.subr.bf16.mxu1 %v2272_v34 }
 0x6a7   :  { %1501 = vmatpush1.bf16.msra.mxu0 %v2748_v9  ;;  %1975 = vmatpush3.bf16.msra.mxu1 %v2162_v19 }
 0x6a8   :  { %1502 = vmatprep.subr.bf16.mxu0 %v2752_v42  ;;  %1976 = vmatprep.subr.bf16.mxu1 %v2272_v34  ;;  %v1376_v42 = vld [vmem:[#allocation3 + $0x50] ss:$12 sps:$4 sm:$0xff]  }
 0x6a9   :  { %v1379_v45 = vunpack.c.l.bf16 %v1376_v42  ;;  %v1491_v55 = vunpack.c.h.bf16 %v1376_v42 }
 0x6ab   :  { %1503 = vmatpush1.bf16.msra.mxu0 %v2756_v22  ;;  %1977 = vmatpush3.bf16.msra.mxu1 %v2163_v10 }
 0x6ac   :  { %1504 = vmatprep.subr.bf16.mxu0 %v2164_v62  ;;  %1978 = vmatprep.subr.bf16.mxu1 %v2272_v34 }
 0x6af   :  { %1505 = vmatpush1.bf16.msra.mxu0 %v2165_v8  ;;  %1979 = vmatpush3.bf16.msra.mxu1 %v2166_v63 }
 0x6b0   :  { %1506 = vmatprep.subr.bf16.mxu0 %v2167_v1  ;;  %1980 = vmatprep.subr.bf16.mxu1 %v2272_v34 }
 0x6b3   :  { %1507 = vmatpush1.bf16.msra.mxu0 %v2168_v2  ;;  %1981 = vmatpush3.bf16.msra.mxu1 %v2169_v3 }
 0x769   :  { %v1414_v5 = vpop.f32.mrb[40].mxu0  ;;  %v1455_v60 = vpop.f32.mrb[32].mxu1 }
 0x76a   :  { %v1461_v11 = vadd.f32 %v1414_v5, %v1377_v4  ;;  %v1416_v12 = vpop.f32.mrb[41].mxu0  ;;  %v1964_v24 = vpop.f32.mrb[33].mxu1  ;;  %v1475_v56 = vadd.f32 %v2519_v7, %v1455_v60 }
 0x76b   :  { %v1468_v61 = vadd.f32 %v1416_v12, %v1378_v6  ;;  %v1418_v13 = vpop.f32.mrb[42].mxu0  ;;  %v1458_v14 = vpop.f32.mrb[34].mxu1 }
 0x76c   :  { %v1698_v15 = vmul.f32 -1.442695, %v1461_v11  ;;  %v1419_v43 = vpop.f32.mrb[43].mxu0  ;;  %v1965_v16 = vpop.f32.mrb[35].mxu1 }
 0x76d   :  { %v1699_v34 = vmul.f32 -1.442695, %v1468_v61 }
 0x76e   :  { %2126 = vpow2.f32 %v1698_v15 }
 0x76f   :  { %2128 = vpow2.f32 %v1699_v34 }
 0x778   :  { %v2127_v21 = vpop.eup %2126 }
 0x779   :  { %v1465_v20 = vadd.f32 1.0, %v2127_v21  ;;  %v2129_v39 = vpop.eup %2128 }
 0x77a   :  { %v1472_v9 = vadd.f32 1.0, %v2129_v39 }
 0x77b   :  { %2130 = vrcp.f32 %v1465_v20 }
 0x77c   :  { %2132 = vrcp.f32 %v1472_v9 }
 0x785   :  { %v2131_v22 = vpop.eup %2130 }
 0x786   :  { %v1476_v46 = vmul.f32 %v2131_v22, %v1475_v56  ;;  %v2133_v47 = vpop.eup %2132 }
 0x787   :  { %v1479_v51 = vsub.f32 1.0, %v2133_v47  ;;  %v1481_v48 = vmul.f32 %v2133_v47, %v2775_v53 }
 0x788   :  { %v1477_v49 = vadd.f32 %v1476_v46, %v1379_v45 }
 0x78a   :  { %2134 = vtanh.f32 %v1477_v49 }
 0x794   :  { %v2135_v52 = vpop.eup %2134 }
 0x795   :  { %v1480_v23 = vmul.f32 %v2135_v52, %v1479_v51 }
 0x797   :  { %v1482_v25 = vadd.f32 %v1481_v48, %v1480_v23 }
 0x799   :  { %v1483_v28 = vpack.c.bf16 %v1482_v25, %v1482_v25 }
 0x79b   :  { %1485 = vst [vmem:[#allocation10 + $0x18] sm:$0xf] %v1483_v28  ;;  %1525 = vmatmul.mubr.bf16.vlgmr.msra.gmra.mrb[44].mxu0 %v1483_v28  ;;  %1983 = vmatmul.mubr.bf16.vlgmr.msra.gmra.mrb[36].mxu1 %v1483_v28 }
 0x86e   :  { %v1526_v50 = vpop.f32.mrb[44].mxu0  ;;  %v1567_v37 = vpop.f32.mrb[36].mxu1 }
 0x86f   :  { %v1573_v26 = vadd.f32 %v1526_v50, %v1489_v31  ;;  %v1528_v27 = vpop.f32.mrb[45].mxu0  ;;  %v1984_v29 = vpop.f32.mrb[37].mxu1  ;;  %v1587_v53 = vadd.f32 %v2519_v7, %v1567_v37 }
 0x870   :  { %v1580_v30 = vadd.f32 %v1528_v27, %v1490_v54  ;;  %v1530_v32 = vpop.f32.mrb[46].mxu0  ;;  %v1570_v17 = vpop.f32.mrb[38].mxu1 }
 0x871   :  { %v1700_v33 = vmul.f32 -1.442695, %v1573_v26  ;;  %v1531_v35 = vpop.f32.mrb[47].mxu0  ;;  %v1985_v36 = vpop.f32.mrb[39].mxu1 }
 0x872   :  { %v1701_v38 = vmul.f32 -1.442695, %v1580_v30 }
 0x873   :  { %2136 = vpow2.f32 %v1700_v33 }
 0x874   :  { %2138 = vpow2.f32 %v1701_v38 }
 0x87d   :  { %v2137_v40 = vpop.eup %2136 }
 0x87e   :  { %v1577_v41 = vadd.f32 1.0, %v2137_v40  ;;  %v2139_v44 = vpop.eup %2138 }
 0x87f   :  { %v1584_v18 = vadd.f32 1.0, %v2139_v44 }
 0x880   :  { %2140 = vrcp.f32 %v1577_v41 }
 0x881   :  { %2142 = vrcp.f32 %v1584_v18 }
 0x88a   :  { %v2141_v57 = vpop.eup %2140 }
 0x88b   :  { %v1588_v59 = vmul.f32 %v2141_v57, %v1587_v53  ;;  %v2143_v0 = vpop.eup %2142 }
 0x88c   :  { %v1591_v19 = vsub.f32 1.0, %v2143_v0  ;;  %v1593_v8 = vmul.f32 %v2143_v0, %v1482_v25 }
 0x88d   :  { %v1589_v58 = vadd.f32 %v1588_v59, %v1491_v55 }
 0x88f   :  { %2144 = vtanh.f32 %v1589_v58 }
 0x899   :  { %v2145_v10 = vpop.eup %2144 }
 0x89a   :  { %v1592_v62 = vmul.f32 %v2145_v10, %v1591_v19 }
 0x89c   :  { %v1594_v63 = vadd.f32 %v1593_v8, %v1592_v62 }
 0x89e   :  { %v1595_v1 = vpack.c.bf16 %v1594_v63, %v1594_v63 }
 0x8a0   :  { %1597 = vst [vmem:[#allocation10 + $0x1c] sm:$0xf] %v1595_v1 }
 0x8a1   :  { %2247 = shalt.err (!%p2244_p0)
}
 0x8a2   :  { %s2248_s12 = scalar_lea.hbm %s2828_s5, 512 }
 0x8a3   :  { %p2249_p1 = scmp.ne.s32.totalorder %s2828_s5, %s2248_s12  ;;  %p2252_p2 = scmp.lt.u32.totalorder %s2248_s12, %s2828_s5 }
 0x8a5   :  { %p2254_p3 = pnand %p2252_p2, %p2249_p1 }
 0x8a7   :  { %2257 = shalt.err (!%p2254_p3)
}
 0x8a8   :  { %1610 = dma.vmem_to_hbm [thread:$0]  %s1605_s8, 512, %s2828_s5, [#allocation6], %s2268_s1, %s2268_s1, %s2269_s17  }
 0x8a9   :  { %2262 = dma.done.wait [#allocation6], 512  }
 0x8aa   :  { %2263 = vsyncadd [#allocation6], 4294966784 }
 0x8ab   :  { %1614 = vsyncpa [#allocation5], 1 }
 0x8ac   :  { %1615 = vsyncpa [#allocation8], 1 }
 0x8ad   :  { %1616 = vsyncpa [#allocation6], 1 }

</bundles_post_ra>
